<compile_context>
chip_gen: v7x
topology: tpu7x:2x2x1
jax: 0.10.0
libtpu: 0.0.40
codegen_flags: <defaults>
</compile_context>

<pallas_src>
import numpy as np
import jax
import jax.numpy as jnp
from jax.experimental import pallas as pl
from jax.experimental.pallas import tpu as pltpu


# ----------------------------------------------------------------------------
# Fused kernel: conv1+ReLU -> conv2+ReLU -> flatten -> linear1+ReLU -> linear.
# Activation rows are (n, h); lanes are (c, w). Each conv = 3 shifted-row
# matmuls (bf16 in, f32 accumulate) against pre-banded weights.
# ----------------------------------------------------------------------------
def _convnet_kernel(x_ref, k1_ref, b1_ref, k2_ref, b2_ref,
                    l1w_ref, l1b_ref, fw_ref, fb_ref, o_ref,
                    xpad1_ref, xpad2_ref):
    N, H, _ = x_ref.shape            # x lanes = c0*W + w
    KH = k1_ref.shape[0]
    CW1 = k1_ref.shape[2]            # conv1 out lanes = c1*W + w
    CW2 = k2_ref.shape[2]            # conv2 out lanes = c2*W + w
    NH = N * H

    def conv(xpad_ref, k_ref, b_ref, interior):
        cw = xpad_ref.shape[-1]
        # Zero only the two H-halo rows; interior is overwritten directly.
        zrow = jnp.zeros((N, 1, cw), xpad_ref.dtype)
        xpad_ref[:, 0:1, :] = zrow
        xpad_ref[:, H + 1:H + 2, :] = zrow
        xpad_ref[:, 1:1 + H, :] = interior
        # One matmul per kernel row; W-boundary is baked into k_ref[di].
        acc = jnp.dot(xpad_ref[:, 0:H, :].reshape(NH, cw), k_ref[0],
                      preferred_element_type=jnp.float32)
        for di in range(1, KH):
            lhs = xpad_ref[:, di:di + H, :].reshape(NH, cw)
            acc = acc + jnp.dot(lhs, k_ref[di],
                                preferred_element_type=jnp.float32)
        return jnp.maximum(acc + b_ref[...], 0.0)

    y1 = conv(xpad1_ref, k1_ref, b1_ref, x_ref[...].astype(jnp.bfloat16))
    y2 = conv(xpad2_ref, k2_ref, b2_ref,
              y1.astype(jnp.bfloat16).reshape(N, H, CW1))

    # Flatten: rows (n,h), lanes (c2,w) -> (N, H*C2*W); linear1 weight rows were
    # permuted offline to this (h, c2, w) order and stored transposed (dense).
    xflat = y2.astype(jnp.bfloat16).reshape(N, H * CW2)
    h1 = jax.lax.dot_general(xflat, l1w_ref[...],
                             dimension_numbers=(((1,), (1,)), ((), ())),
                             preferred_element_type=jnp.float32)
    h1 = jnp.maximum(h1 + l1b_ref[...], 0.0)
    out = jnp.dot(h1.astype(jnp.bfloat16), fw_ref[...],
                  preferred_element_type=jnp.float32) + fb_ref[...]
    o_ref[...] = out.astype(o_ref.dtype)


def convnet_pallas(x_lane, k1, b1, k2, b2, l1wT, l1b, fw, fb):
    N, H, CW0 = x_lane.shape
    CW1 = k1.shape[2]
    num_classes = fw.shape[1]
    return pl.pallas_call(
        _convnet_kernel,
        out_shape=jax.ShapeDtypeStruct((N, num_classes), jnp.float32),
        scratch_shapes=[
            pltpu.VMEM((N, H + 2, CW0), jnp.bfloat16),   # H-padded conv1 input
            pltpu.VMEM((N, H + 2, CW1), jnp.bfloat16),   # H-padded conv2 input
        ],
    )(x_lane, k1, b1, k2, b2, l1wT, l1b, fw, fb)


@jax.jit
def convnet_forward(x_nchw, p):
    N, C, H, W = x_nchw.shape
    # NCHW -> (N, H, C*W): lanes become (c, w). One tiny XLA layout op.
    x_lane = jnp.transpose(x_nchw, (0, 2, 1, 3)).reshape(N, H, C * W)
    return convnet_pallas(x_lane, p["k1"], p["b1"], p["k2"], p["b2"],
                          p["l1wT"], p["l1b"], p["fw"], p["fb"])


# ----------------------------------------------------------------------------
# Offline parameter preparation.
# ----------------------------------------------------------------------------
def _conv_tap_weights(w_hwio, W):
    """Banded per-kernel-row matrices (KH, Cin*W, Cout*W) so that
    conv(x) row-block = sum_di shifted_rows(x, di) @ mats[di].
    The W-boundary (same padding) is handled by omitting out-of-range taps."""
    KH, KW, Cin, Cout = (int(d) for d in w_hwio.shape)
    pad = KW // 2
    w_np = np.asarray(w_hwio, np.float32)
    mats = np.zeros((KH, Cin * W, Cout * W), np.float32)
    w_out = np.arange(W)
    for di in range(KH):
        for dj in range(KW):
            w_in = w_out + dj - pad
            valid = (w_in >= 0) & (w_in < W)
            wi, wo = w_in[valid], w_out[valid]
            for ci in range(Cin):
                for co in range(Cout):
                    mats[di, ci * W + wi, co * W + wo] = w_np[di, dj, ci, co]
    return mats


def prepare_pallas_params(params, spatial):
    """bf16 weight casts, banded conv matrices, lane-ordered biases, and the
    linear1 weight permuted from PyTorch (c,h,w) flatten order to the kernel's
    (h,c,w) order and stored transposed (lane-dense, contiguous DMA)."""
    H, W = spatial
    (cw1, cb1), (cw2, cb2) = params["conv_blocks"]
    lw, lb = params["linear_blocks"][0]
    fw, fb = params["linear_final"]
    C2 = int(cw2.shape[-1])
    F = int(lw.shape[-1])

    k1 = _conv_tap_weights(cw1, W)                      # (3, C0*W, C1*W)
    k2 = _conv_tap_weights(cw2, W)                      # (3, C1*W, C2*W)
    b1 = np.repeat(np.asarray(cb1, np.float32), W)[None, :]   # lane c1*W + w
    b2 = np.repeat(np.asarray(cb2, np.float32), W)[None, :]   # lane c2*W + w

    lw_np = np.asarray(lw, np.float32)                  # rows: c2*H*W + h*W + w
    lw_perm = lw_np.reshape(C2, H, W, F).transpose(1, 0, 2, 3).reshape(H * C2 * W, F)
    l1wT = np.ascontiguousarray(lw_perm.T)              # (F, H*C2*W) lane-dense

    return {
        "k1": jnp.asarray(k1, jnp.bfloat16),
        "b1": jnp.asarray(b1, jnp.float32),
        "k2": jnp.asarray(k2, jnp.bfloat16),
        "b2": jnp.asarray(b2, jnp.float32),
        "l1wT": jnp.asarray(l1wT, jnp.bfloat16),
        "l1b": jnp.asarray(lb, jnp.float32).reshape(1, -1),
        "fw": jnp.asarray(fw, jnp.bfloat16),
        "fb": jnp.asarray(fb, jnp.float32).reshape(1, -1),
    }


# ----------------------------------------------------------------------------
# Parameter construction (deterministic); BatchNorm folded into weight / bias.
# ----------------------------------------------------------------------------
def _fold_bn(w, bias, gamma, beta, mean, var, eps=1e-5):
    scale = gamma / jnp.sqrt(var + eps)  # broadcasts over last (out) dim of w
    return w * scale, (bias - mean) * scale + beta


def make_params(key):
    # conv_params: two 3x3 convs, stride 1, pad 1  (4->8->16 channels)
    conv_cfg = [(4, 8, 3), (8, 16, 3)]
    # linear_params: 1x1 "convs" on the flattened features (4096 -> 32 -> 10)
    lin_cfg = [(16 * 16 * 16, 32), (32, 10)]

    params = {"conv_blocks": [], "linear_blocks": []}

    for cin, cout, k in conv_cfg:
        key, k1, k2, k3, k4, k5, k6 = jax.random.split(key, 7)
        w = jax.random.normal(k1, (k, k, cin, cout), jnp.float32) * 0.1
        bias = jax.random.normal(k2, (cout,), jnp.float32) * 0.1
        gamma = jax.random.uniform(k3, (cout,), jnp.float32, 0.5, 1.5)
        beta = jax.random.normal(k4, (cout,), jnp.float32) * 0.1
        mean = jax.random.normal(k5, (cout,), jnp.float32) * 0.1
        var = jax.random.uniform(k6, (cout,), jnp.float32, 0.5, 1.5)
        params["conv_blocks"].append(_fold_bn(w, bias, gamma, beta, mean, var))

    for fin, fout in lin_cfg[:-1]:
        key, k1, k2, k3, k4, k5, k6 = jax.random.split(key, 7)
        w = jax.random.normal(k1, (fin, fout), jnp.float32) / jnp.sqrt(float(fin))
        bias = jax.random.normal(k2, (fout,), jnp.float32) * 0.1
        gamma = jax.random.uniform(k3, (fout,), jnp.float32, 0.5, 1.5)
        beta = jax.random.normal(k4, (fout,), jnp.float32) * 0.1
        mean = jax.random.normal(k5, (fout,), jnp.float32) * 0.1
        var = jax.random.uniform(k6, (fout,), jnp.float32, 0.5, 1.5)
        params["linear_blocks"].append(_fold_bn(w, bias, gamma, beta, mean, var))

    fin, fout = lin_cfg[-1]
    key, k1, k2 = jax.random.split(key, 3)
    w = jax.random.normal(k1, (fin, fout), jnp.float32) / jnp.sqrt(float(fin))
    bias = jax.random.normal(k2, (fout,), jnp.float32) * 0.1
    params["linear_final"] = (w, bias)
    return params


# ----------------------------------------------------------------------------
# Pure-JAX f32 reference (NCHW, lax.conv) for correctness checking.
# ----------------------------------------------------------------------------
def reference_forward(x_nchw, params):
    x = x_nchw
    for w_hwio, b in params["conv_blocks"]:
        w_oihw = jnp.transpose(w_hwio, (3, 2, 0, 1))
        x = jax.lax.conv_general_dilated(
            x, w_oihw, window_strides=(1, 1), padding=((1, 1), (1, 1)),
            dimension_numbers=("NCHW", "OIHW", "NCHW"),
        )
        x = jnp.maximum(x + b[None, :, None, None], 0.0)
    x = x.reshape(x.shape[0], -1)
    for w, b in params["linear_blocks"]:
        x = jnp.maximum(x @ w + b, 0.0)
    w, b = params["linear_final"]
    return x @ w + b


if __name__ == "__main__":
    key = jax.random.PRNGKey(0)
    pkey, xkey = jax.random.split(key)
    params = make_params(pkey)
    prepped = prepare_pallas_params(params, spatial=(16, 16))

    # PyTorch-style NCHW input: batch=2, channels=4, spatial=16x16
    x = jax.random.normal(xkey, (2, 4, 16, 16), jnp.float32)

    out = convnet_forward(x, prepped)
    out = jax.block_until_ready(out)
    assert out.shape == (2, 10), out.shape

    ref = reference_forward(x, params)
    max_err = float(jnp.max(jnp.abs(out - ref)))
    # bf16 MXU inputs (f32 accumulation) -> bf16-appropriate tolerance vs f32 ref.
    if not bool(jnp.allclose(out, ref, atol=3e-2, rtol=1e-2)):
        raise AssertionError(
            f"Pallas ConvNet output does not match JAX reference (max abs err {max_err})")

    print("KERNEL_OK")
</pallas_src>

<mosaic_0001>
module attributes {stable_mosaic.version = 11 : i64} {
  func.func @_convnet_kernel(%arg0: memref<2x16x64xf32, #tpu.memory_space<vmem>>, %arg1: memref<3x64x128xbf16, #tpu.memory_space<vmem>>, %arg2: memref<1x128xf32, #tpu.memory_space<vmem>>, %arg3: memref<3x128x256xbf16, #tpu.memory_space<vmem>>, %arg4: memref<1x256xf32, #tpu.memory_space<vmem>>, %arg5: memref<32x4096xbf16, #tpu.memory_space<vmem>>, %arg6: memref<1x32xf32, #tpu.memory_space<vmem>>, %arg7: memref<32x10xbf16, #tpu.memory_space<vmem>>, %arg8: memref<1x10xf32, #tpu.memory_space<vmem>>, %arg9: memref<2x10xf32, #tpu.memory_space<vmem>>, %arg10: memref<2x18x64xbf16, #tpu.memory_space<vmem>>, %arg11: memref<2x18x128xbf16, #tpu.memory_space<vmem>>) attributes {dimension_semantics = [], scalar_prefetch = 0 : i64, scratch_operands = 2 : i64, tpu.core_type = #tpu.core_type<tc>} {
    %c0 = arith.constant 0 : index
    %c0_0 = arith.constant 0 : index
    %c0_1 = arith.constant 0 : index
    %0 = vector.load %arg0[%c0, %c0_0, %c0_1] : memref<2x16x64xf32, #tpu.memory_space<vmem>>, vector<2x16x64xf32>
    %1 = arith.truncf %0 : vector<2x16x64xf32> to vector<2x16x64xbf16>
    %cst = arith.constant 0.000000e+00 : bf16
    %2 = vector.broadcast %cst : bf16 to vector<2x1x64xbf16>
    %c0_2 = arith.constant 0 : index
    %c0_3 = arith.constant 0 : index
    %c0_4 = arith.constant 0 : index
    %3 = vector.load %arg10[%c0_2, %c0_3, %c0_4] : memref<2x18x64xbf16, #tpu.memory_space<vmem>>, vector<2x1x64xbf16>
    tpu.vector_store %arg10[%c0_2, %c0_3, %c0_4], %2 {strides = array<i32>} : memref<2x18x64xbf16, #tpu.memory_space<vmem>>, vector<2x1x64xbf16>,
    %c0_5 = arith.constant 0 : index
    %c17 = arith.constant 17 : index
    %c0_6 = arith.constant 0 : index
    %4 = vector.load %arg10[%c0_5, %c17, %c0_6] : memref<2x18x64xbf16, #tpu.memory_space<vmem>>, vector<2x1x64xbf16>
    tpu.vector_store %arg10[%c0_5, %c17, %c0_6], %2 {strides = array<i32>} : memref<2x18x64xbf16, #tpu.memory_space<vmem>>, vector<2x1x64xbf16>,
    %c0_7 = arith.constant 0 : index
    %c1 = arith.constant 1 : index
    %c0_8 = arith.constant 0 : index
    %5 = vector.load %arg10[%c0_7, %c1, %c0_8] : memref<2x18x64xbf16, #tpu.memory_space<vmem>>, vector<2x16x64xbf16>
    tpu.vector_store %arg10[%c0_7, %c1, %c0_8], %1 {strides = array<i32>} : memref<2x18x64xbf16, #tpu.memory_space<vmem>>, vector<2x16x64xbf16>,
    %c0_9 = arith.constant 0 : index
    %c0_10 = arith.constant 0 : index
    %c0_11 = arith.constant 0 : index
    %6 = vector.load %arg10[%c0_9, %c0_10, %c0_11] : memref<2x18x64xbf16, #tpu.memory_space<vmem>>, vector<2x16x64xbf16>
    %7 = vector.shape_cast %6 : vector<2x16x64xbf16> to vector<32x64xbf16>
    %c0_12 = arith.constant 0 : index
    %c0_13 = arith.constant 0 : index
    %c0_14 = arith.constant 0 : index
    %8 = vector.load %arg1[%c0_12, %c0_13, %c0_14] : memref<3x64x128xbf16, #tpu.memory_space<vmem>>, vector<1x64x128xbf16>
    %9 = vector.shape_cast %8 : vector<1x64x128xbf16> to vector<64x128xbf16>
    %cst_15 = arith.constant dense<0.000000e+00> : vector<32x128xf32>
    %10 = tpu.matmul %7, %9, %cst_15 {dimension_numbers = #tpu.dot_dimension_numbers<[1], [0], [0], [1], [0, 0, 1, 1], [], []>} : vector<32x64xbf16>, vector<64x128xbf16>, vector<32x128xf32> -> vector<32x128xf32>
    %c0_16 = arith.constant 0 : index
    %c1_17 = arith.constant 1 : index
    %c0_18 = arith.constant 0 : index
    %11 = vector.load %arg10[%c0_16, %c1_17, %c0_18] : memref<2x18x64xbf16, #tpu.memory_space<vmem>>, vector<2x16x64xbf16>
    %12 = vector.shape_cast %11 : vector<2x16x64xbf16> to vector<32x64xbf16>
    %c1_19 = arith.constant 1 : index
    %c0_20 = arith.constant 0 : index
    %c0_21 = arith.constant 0 : index
    %13 = vector.load %arg1[%c1_19, %c0_20, %c0_21] : memref<3x64x128xbf16, #tpu.memory_space<vmem>>, vector<1x64x128xbf16>
    %14 = vector.shape_cast %13 : vector<1x64x128xbf16> to vector<64x128xbf16>
    %cst_22 = arith.constant dense<0.000000e+00> : vector<32x128xf32>
    %15 = tpu.matmul %12, %14, %cst_22 {dimension_numbers = #tpu.dot_dimension_numbers<[1], [0], [0], [1], [0, 0, 1, 1], [], []>} : vector<32x64xbf16>, vector<64x128xbf16>, vector<32x128xf32> -> vector<32x128xf32>
    %16 = arith.addf %10, %15 : vector<32x128xf32>
    %c0_23 = arith.constant 0 : index
    %c2 = arith.constant 2 : index
    %c0_24 = arith.constant 0 : index
    %17 = vector.load %arg10[%c0_23, %c2, %c0_24] : memref<2x18x64xbf16, #tpu.memory_space<vmem>>, vector<2x16x64xbf16>
    %18 = vector.shape_cast %17 : vector<2x16x64xbf16> to vector<32x64xbf16>
    %c2_25 = arith.constant 2 : index
    %c0_26 = arith.constant 0 : index
    %c0_27 = arith.constant 0 : index
    %19 = vector.load %arg1[%c2_25, %c0_26, %c0_27] : memref<3x64x128xbf16, #tpu.memory_space<vmem>>, vector<1x64x128xbf16>
    %20 = vector.shape_cast %19 : vector<1x64x128xbf16> to vector<64x128xbf16>
    %cst_28 = arith.constant dense<0.000000e+00> : vector<32x128xf32>
    %21 = tpu.matmul %18, %20, %cst_28 {dimension_numbers = #tpu.dot_dimension_numbers<[1], [0], [0], [1], [0, 0, 1, 1], [], []>} : vector<32x64xbf16>, vector<64x128xbf16>, vector<32x128xf32> -> vector<32x128xf32>
    %22 = arith.addf %16, %21 : vector<32x128xf32>
    %c0_29 = arith.constant 0 : index
    %c0_30 = arith.constant 0 : index
    %23 = vector.load %arg2[%c0_29, %c0_30] : memref<1x128xf32, #tpu.memory_space<vmem>>, vector<1x128xf32>
    %24 = vector.broadcast %23 : vector<1x128xf32> to vector<32x128xf32>
    %25 = arith.addf %22, %24 : vector<32x128xf32>
    %cst_31 = arith.constant 0.000000e+00 : f32
    %26 = vector.broadcast %cst_31 : f32 to vector<32x128xf32>
    %27 = arith.maximumf %25, %26 : vector<32x128xf32>
    %28 = arith.truncf %27 : vector<32x128xf32> to vector<32x128xbf16>
    %29 = vector.shape_cast %28 : vector<32x128xbf16> to vector<2x16x128xbf16>
    %cst_32 = arith.constant 0.000000e+00 : bf16
    %30 = vector.broadcast %cst_32 : bf16 to vector<2x1x128xbf16>
    %c0_33 = arith.constant 0 : index
    %c0_34 = arith.constant 0 : index
    %c0_35 = arith.constant 0 : index
    %31 = vector.load %arg11[%c0_33, %c0_34, %c0_35] : memref<2x18x128xbf16, #tpu.memory_space<vmem>>, vector<2x1x128xbf16>
    tpu.vector_store %arg11[%c0_33, %c0_34, %c0_35], %30 {strides = array<i32>} : memref<2x18x128xbf16, #tpu.memory_space<vmem>>, vector<2x1x128xbf16>,
    %c0_36 = arith.constant 0 : index
    %c17_37 = arith.constant 17 : index
    %c0_38 = arith.constant 0 : index
    %32 = vector.load %arg11[%c0_36, %c17_37, %c0_38] : memref<2x18x128xbf16, #tpu.memory_space<vmem>>, vector<2x1x128xbf16>
    tpu.vector_store %arg11[%c0_36, %c17_37, %c0_38], %30 {strides = array<i32>} : memref<2x18x128xbf16, #tpu.memory_space<vmem>>, vector<2x1x128xbf16>,
    %c0_39 = arith.constant 0 : index
    %c1_40 = arith.constant 1 : index
    %c0_41 = arith.constant 0 : index
    %33 = vector.load %arg11[%c0_39, %c1_40, %c0_41] : memref<2x18x128xbf16, #tpu.memory_space<vmem>>, vector<2x16x128xbf16>
    tpu.vector_store %arg11[%c0_39, %c1_40, %c0_41], %29 {strides = array<i32>} : memref<2x18x128xbf16, #tpu.memory_space<vmem>>, vector<2x16x128xbf16>,
    %c0_42 = arith.constant 0 : index
    %c0_43 = arith.constant 0 : index
    %c0_44 = arith.constant 0 : index
    %34 = vector.load %arg11[%c0_42, %c0_43, %c0_44] : memref<2x18x128xbf16, #tpu.memory_space<vmem>>, vector<2x16x128xbf16>
    %35 = vector.shape_cast %34 : vector<2x16x128xbf16> to vector<32x128xbf16>
    %c0_45 = arith.constant 0 : index
    %c0_46 = arith.constant 0 : index
    %c0_47 = arith.constant 0 : index
    %36 = vector.load %arg3[%c0_45, %c0_46, %c0_47] : memref<3x128x256xbf16, #tpu.memory_space<vmem>>, vector<1x128x256xbf16>
    %37 = vector.shape_cast %36 : vector<1x128x256xbf16> to vector<128x256xbf16>
    %cst_48 = arith.constant dense<0.000000e+00> : vector<32x256xf32>
    %38 = tpu.matmul %35, %37, %cst_48 {dimension_numbers = #tpu.dot_dimension_numbers<[1], [0], [0], [1], [0, 0, 1, 1], [], []>} : vector<32x128xbf16>, vector<128x256xbf16>, vector<32x256xf32> -> vector<32x256xf32>
    %c0_49 = arith.constant 0 : index
    %c1_50 = arith.constant 1 : index
    %c0_51 = arith.constant 0 : index
    %39 = vector.load %arg11[%c0_49, %c1_50, %c0_51] : memref<2x18x128xbf16, #tpu.memory_space<vmem>>, vector<2x16x128xbf16>
    %40 = vector.shape_cast %39 : vector<2x16x128xbf16> to vector<32x128xbf16>
    %c1_52 = arith.constant 1 : index
    %c0_53 = arith.constant 0 : index
    %c0_54 = arith.constant 0 : index
    %41 = vector.load %arg3[%c1_52, %c0_53, %c0_54] : memref<3x128x256xbf16, #tpu.memory_space<vmem>>, vector<1x128x256xbf16>
    %42 = vector.shape_cast %41 : vector<1x128x256xbf16> to vector<128x256xbf16>
    %cst_55 = arith.constant dense<0.000000e+00> : vector<32x256xf32>
    %43 = tpu.matmul %40, %42, %cst_55 {dimension_numbers = #tpu.dot_dimension_numbers<[1], [0], [0], [1], [0, 0, 1, 1], [], []>} : vector<32x128xbf16>, vector<128x256xbf16>, vector<32x256xf32> -> vector<32x256xf32>
    %44 = arith.addf %38, %43 : vector<32x256xf32>
    %c0_56 = arith.constant 0 : index
    %c2_57 = arith.constant 2 : index
    %c0_58 = arith.constant 0 : index
    %45 = vector.load %arg11[%c0_56, %c2_57, %c0_58] : memref<2x18x128xbf16, #tpu.memory_space<vmem>>, vector<2x16x128xbf16>
    %46 = vector.shape_cast %45 : vector<2x16x128xbf16> to vector<32x128xbf16>
    %c2_59 = arith.constant 2 : index
    %c0_60 = arith.constant 0 : index
    %c0_61 = arith.constant 0 : index
    %47 = vector.load %arg3[%c2_59, %c0_60, %c0_61] : memref<3x128x256xbf16, #tpu.memory_space<vmem>>, vector<1x128x256xbf16>
    %48 = vector.shape_cast %47 : vector<1x128x256xbf16> to vector<128x256xbf16>
    %cst_62 = arith.constant dense<0.000000e+00> : vector<32x256xf32>
    %49 = tpu.matmul %46, %48, %cst_62 {dimension_numbers = #tpu.dot_dimension_numbers<[1], [0], [0], [1], [0, 0, 1, 1], [], []>} : vector<32x128xbf16>, vector<128x256xbf16>, vector<32x256xf32> -> vector<32x256xf32>
    %50 = arith.addf %44, %49 : vector<32x256xf32>
    %c0_63 = arith.constant 0 : index
    %c0_64 = arith.constant 0 : index
    %51 = vector.load %arg4[%c0_63, %c0_64] : memref<1x256xf32, #tpu.memory_space<vmem>>, vector<1x256xf32>
    %52 = vector.broadcast %51 : vector<1x256xf32> to vector<32x256xf32>
    %53 = arith.addf %50, %52 : vector<32x256xf32>
    %cst_65 = arith.constant 0.000000e+00 : f32
    %54 = vector.broadcast %cst_65 : f32 to vector<32x256xf32>
    %55 = arith.maximumf %53, %54 : vector<32x256xf32>
    %56 = arith.truncf %55 : vector<32x256xf32> to vector<32x256xbf16>
    %57 = vector.shape_cast %56 : vector<32x256xbf16> to vector<2x4096xbf16>
    %c0_66 = arith.constant 0 : index
    %c0_67 = arith.constant 0 : index
    %58 = vector.load %arg5[%c0_66, %c0_67] : memref<32x4096xbf16, #tpu.memory_space<vmem>>, vector<32x4096xbf16>
    %cst_68 = arith.constant dense<0.000000e+00> : vector<2x32xf32>
    %59 = tpu.matmul %57, %58, %cst_68 {dimension_numbers = #tpu.dot_dimension_numbers<[1], [1], [0], [0], [0, 0, 1, 0], [], []>} : vector<2x4096xbf16>, vector<32x4096xbf16>, vector<2x32xf32> -> vector<2x32xf32>
    %c0_69 = arith.constant 0 : index
    %c0_70 = arith.constant 0 : index
    %60 = vector.load %arg6[%c0_69, %c0_70] : memref<1x32xf32, #tpu.memory_space<vmem>>, vector<1x32xf32>
    %61 = vector.broadcast %60 : vector<1x32xf32> to vector<2x32xf32>
    %62 = arith.addf %59, %61 : vector<2x32xf32>
    %cst_71 = arith.constant 0.000000e+00 : f32
    %63 = vector.broadcast %cst_71 : f32 to vector<2x32xf32>
    %64 = arith.maximumf %62, %63 : vector<2x32xf32>
    %65 = arith.truncf %64 : vector<2x32xf32> to vector<2x32xbf16>
    %c0_72 = arith.constant 0 : index
    %c0_73 = arith.constant 0 : index
    %66 = vector.load %arg7[%c0_72, %c0_73] : memref<32x10xbf16, #tpu.memory_space<vmem>>, vector<32x10xbf16>
    %cst_74 = arith.constant dense<0.000000e+00> : vector<2x10xf32>
    %67 = tpu.matmul %65, %66, %cst_74 {dimension_numbers = #tpu.dot_dimension_numbers<[1], [0], [0], [1], [0, 0, 1, 1], [], []>} : vector<2x32xbf16>, vector<32x10xbf16>, vector<2x10xf32> -> vector<2x10xf32>
    %c0_75 = arith.constant 0 : index
    %c0_76 = arith.constant 0 : index
    %68 = vector.load %arg8[%c0_75, %c0_76] : memref<1x10xf32, #tpu.memory_space<vmem>>, vector<1x10xf32>
    %69 = vector.broadcast %68 : vector<1x10xf32> to vector<2x10xf32>
    %70 = arith.addf %67, %69 : vector<2x10xf32>
    %c0_77 = arith.constant 0 : index
    %c0_78 = arith.constant 0 : index
    %71 = vector.load %arg9[%c0_77, %c0_78] : memref<2x10xf32, #tpu.memory_space<vmem>>, vector<2x10xf32>
    tpu.vector_store %arg9[%c0_77, %c0_78], %70 {strides = array<i32>} : memref<2x10xf32, #tpu.memory_space<vmem>>, vector<2x10xf32>,
    return
  }
}

</mosaic_0001>

<bundles_post_ra>
// kernel: convnet_forward.1
= control target key start
LH: loop header
LB: loop body
LE: loop exit
PB: predicated region body
PF: predicated region fallthrough
CT: control target
= control target key end

     0   :  { %14 = vsyncpa [#allocation5], 0  ;;  %s3716_s0 = inlined_call_operand.vmem [shape: f32[2,16,64], index: 0, kind: input, shape index: {}]   ;;  %s3717_s1 = inlined_call_operand.hbm [shape: bf16[3,64,128], index: 1, kind: input, shape index: {}]   ;;  %s3718_s2 = inlined_call_operand.vmem [shape: f32[1,128], index: 2, kind: input, shape index: {}]   ;;  %s3719_s3 = inlined_call_operand.vmem [shape: bf16[3,128,256], index: 3, kind: input, shape index: {}]   ;;  %s3720_s4 = inlined_call_operand.vmem [shape: f32[1,256], index: 4, kind: input, shape index: {}]   ;;  %s3721_s5 = inlined_call_operand.hbm [shape: bf16[32,4096], index: 5, kind: input, shape index: {}]   ;;  %s3722_s6 = inlined_call_operand.vmem [shape: f32[1,32], index: 6, kind: input, shape index: {}]   ;;  %s3723_s7 = inlined_call_operand.vmem [shape: bf16[32,10], index: 7, kind: input, shape index: {}]   ;;  %s3724_s8 = inlined_call_operand.vmem [shape: f32[1,10], index: 8, kind: input, shape index: {}]   ;;  %s3725_s9 = inlined_call_operand.hbm [shape: f32[2,10], index: 9, kind: output, shape index: {}]  }
   0x1   :  { %15 = vsyncpa [#allocation8], 0 }
   0x2   :  { %16 = vsyncpa [#allocation6], 0  ;;  %s3149_s30 = smov [#allocation4]   ;;  %s3077_s13 = scalar_lea.hbm %s3717_s1, 1536 }
   0x3   :  { %s24_s10 = sshll.u32 %s3149_s30, 4  ;;  %p3078_p0 = scmp.ne.s32.totalorder %s3717_s1, %s3077_s13  ;;  %s25_s10 = int_to_ptr.vmem [resolvable:$true] %s24_s10 }
   0x4   :  { %p3081_p1 = scmp.lt.u32.totalorder %s3077_s13, %s3717_s1 }
   0x6   :  { %p3083_p2 = pnand %p3081_p1, %p3078_p0 }
   0x8   :  { %3086 = shalt.err (!%p3083_p2)
}
   0x9   :  { %s3087_s18 = scalar_lea.vmem %s25_s10, 1536  ;;  %p3092_p4 = scmp.lt.s32.totalorder %s25_s10, %s25_s10 }
   0xa   :  { %p3088_p3 = scmp.ne.s32.totalorder %s25_s10, %s3087_s18  ;;  %p3093_p5 = scmp.lt.s32.totalorder %s3087_s18, %s3087_s18 }
   0xc   :  { %p3094_p6 = por %p3093_p5, %p3092_p4 }
   0xe   :  { %p3095_p7 = pnand %p3094_p6, %p3088_p3 }
  0x10   :  { %3098 = shalt.err (!%p3095_p7)
}
  0x11   :  { %s3150_s19 = smov 64   ;;  %s3151_s20 = smov 4  }
  0x12   :  { %30 = dma.hbm_to_vmem [thread:$0]  %s3717_s1, 1536, %s25_s10, [#allocation5], %s3150_s19, %s3150_s19, %s3151_s20  }
  0x13   :  { %s3152_s23 = smov [#allocation7]   ;;  %s3099_s27 = scalar_lea.hbm %s3721_s5, 8192 }
  0x14   :  { %s42_s24 = sshll.u32 %s3152_s23, 4  ;;  %p3100_p8 = scmp.ne.s32.totalorder %s3721_s5, %s3099_s27  ;;  %s43_s24 = int_to_ptr.vmem [resolvable:$true] %s42_s24 }
  0x15   :  { %p3103_p9 = scmp.lt.u32.totalorder %s3099_s27, %s3721_s5 }
  0x17   :  { %p3105_p10 = pnand %p3103_p9, %p3100_p8 }
  0x19   :  { %3108 = shalt.err (!%p3105_p10)
}
  0x1a   :  { %s3109_s12 = scalar_lea.vmem %s43_s24, 8192  ;;  %p3114_p12 = scmp.lt.s32.totalorder %s43_s24, %s43_s24 }
  0x1b   :  { %p3110_p11 = scmp.ne.s32.totalorder %s43_s24, %s3109_s12  ;;  %p3115_p13 = scmp.lt.s32.totalorder %s3109_s12, %s3109_s12 }
  0x1d   :  { %p3116_p0 = por %p3115_p13, %p3114_p12 }
  0x1f   :  { %p3117_p1 = pnand %p3116_p0, %p3110_p11 }
  0x21   :  { %3120 = shalt.err (!%p3117_p1)
}
  0x22   :  { %s3153_s1 = smov 2048   ;;  %s3154_s10 = smov 128  }
  0x23   :  { %48 = dma.hbm_to_vmem [thread:$0]  %s3721_s5, 8192, %s43_s24, [#allocation8], %s3153_s1, %s3153_s1, %s3154_s10  }
  0x24   :  { %3143 = dma.done.wait [#allocation5], 1536  }
  0x25   :  { %3144 = vsyncadd [#allocation5], 4294965760 }
  0x26   :  { %3145 = dma.done.wait [#allocation8], 8192  }
  0x27   :  { %3146 = vsyncadd [#allocation8], 4294959104  ;;  %vm68_vm0 = vcmask 516096   ;;  %vm69_vm1 = vsmask.f32 256  ;;  %v2987_v1 = vld [vmem:[#allocation4 + $0x20] sm:$0xff]  }
  0x28   :  { %vm3235_vm2 = vmand %vm68_vm0, %vm69_vm1  ;;  %vm77_vm3 = vsmask.f32 7938  ;;  %v2988_v2 = vld [vmem:[#allocation4 + $0x28] sm:$0xff]   ;;  %2850 = vmatprep.subr.bf16.mxu1 %v2987_v1  ;;  %v2989_v4 = vld [vmem:[#allocation4 + $0x30] sm:$0xff]   ;;  %vm95_vm5 = vsmask.f32 4368 }
  0x29   :  { %vm3240_vm4 = vmand %vm68_vm0, %vm77_vm3  ;;  %2851 = vmatpush3.bf16.msra.mxu1 %v2987_v1  ;;  %v62_v5 = vld [vmem:[%s3716_s0] sm:$0xff]  ;;  %v63_v6 = vld [vmem:[%s3716_s0 + $0x8] sm:$0xff]  ;;  %vm137_vm6 = vcmask 519168   ;;  %vm168_vm9 = vsmask.f32 3328  ;;  %vm258_vm12 = vcmask 523264  }
  0x2a   :  { %2852 = vmatprep.subr.bf16.mxu1 %v2988_v2  ;;  %v64_v7 = vld [vmem:[%s3716_s0 + $0x10] sm:$0xff]  ;;  %v65_v8 = vld [vmem:[%s3716_s0 + $0x18] sm:$0xff]  ;;  %v71_v9 = vld [vmem:[#allocation2] sm:$0x1]  ;;  %v2817_v11 = vpack.c.bf16 %v62_v5, %v62_v5  ;;  %v2818_v12 = vpack.c.bf16 %v63_v6, %v63_v6  ;;  %vm169_vm10 = vsmask.f32 7440 }
  0x2b   :  { %v74_v10 = vld [vmem:[#allocation2 + $0xc] sm:$0x1]  ;;  %v2819_v13 = vpack.c.bf16 %v64_v7, %v64_v7  ;;  %v72_v15 = vsel %vm3235_vm2, 0, %v71_v9  ;;  %v79_v17 = vld [vmem:[#allocation2 + $0x8] sm:$0x1]  ;;  %v2820_v19 = vpack.c.bf16 %v65_v8, %v65_v8  ;;  %v3264_v33 = vld [vmem:[#allocation4] sm:$0xff]  }
  0x2c   :  { %v2990_v14 = vld [vmem:[#allocation4 + $0x38] sm:$0xff]   ;;  %v75_v16 = vsel %vm3235_vm2, 0, %v74_v10  ;;  %v82_v18 = vld [vmem:[#allocation2 + $0x14] sm:$0x1]  ;;  %73 = vst [vmem:[#allocation2] sm:$0x1] %v72_v15  ;;  %vm3268_vm7 = vmor %vm69_vm1, %vm95_vm5 }
  0x2d   :  { %2853 = vmatpush3.bf16.msra.mxu1 %v2988_v2  ;;  %76 = vst [vmem:[#allocation2 + $0xc] sm:$0x1] %v75_v16  ;;  %v80_v20 = vsel %vm3240_vm4, 0, %v79_v17  ;;  %v83_v21 = vsel %vm3240_vm4, 0, %v82_v18  ;;  %v98_v22 = vshrl.u32 %v2817_v11, 16  ;;  %v101_v23 = vshll.u32 %v2817_v11, 16  ;;  %vm3274_vm8 = vmand %vm137_vm6, %vm77_vm3 }
  0x2e   :  { %2854 = vmatprep.subr.bf16.mxu1 %v2989_v4  ;;  %81 = vst [vmem:[#allocation2 + $0x8] sm:$0x1] %v80_v20  ;;  %v106_v24 = vshrl.u32 %v2818_v12, 16  ;;  %v109_v25 = vshll.u32 %v2818_v12, 16  ;;  %v115_v26 = vshrl.u32 %v2819_v13, 16  ;;  %v118_v27 = vshll.u32 %v2819_v13, 16  ;;  %vm3307_vm11 = vmor %vm168_vm9, %vm169_vm10 }
  0x2f   :  { %84 = vst [vmem:[#allocation2 + $0x14] sm:$0x1] %v83_v21  ;;  %v100_v28 = vrot.slane %v98_v22, 7  ;;  %v123_v29 = vshrl.u32 %v2820_v19, 16  ;;  %v126_v30 = vshll.u32 %v2820_v19, 16  ;;  %vm409_vm13 = vcmask 1042432  }
  0x30   :  { %v108_v31 = vrot.slane %v106_v24, 7  ;;  %v117_v32 = vrot.slane %v115_v26, 7  ;;  %vm410_vm14 = vcmask 1046532   ;;  %vm541_vm0 = vcmask 1040384   ;;  %v3039_v8 = vld [vmem:[%s3719_s3 + $0x44] ss:$8 sps:$4 sm:$0xff]  }
  0x31   :  { %2855 = vmatpush3.bf16.msra.mxu1 %v2989_v4  ;;  %v103_v35 = vor.u32 %v101_v23, %v100_v28  ;;  %v104_v36 = vrot.slane %v100_v28, 4  ;;  %v125_v37 = vrot.slane %v123_v29, 7  ;;  %vm3328_vm15 = vmor %vm409_vm13, %vm410_vm14  ;;  %s3159_s27 = smov [#allocation9]  }
  0x32   :  { %2856 = vmatprep.subr.bf16.mxu1 %v2990_v14  ;;  %v111_v38 = vor.u32 %v109_v25, %v108_v31  ;;  %v113_v39 = vrot.slane %v108_v31, 4  ;;  %v120_v40 = vor.u32 %v118_v27, %v117_v32  ;;  %v121_v41 = vrot.slane %v117_v32, 4  ;;  %vm549_vm4 = vmand %vm541_vm0, %vm77_vm3  ;;  %s2601_s28 = sshll.u32 %s3159_s27, 4  ;;  %s2602_s28 = int_to_ptr.vmem [resolvable:$true] %s2601_s28 }
  0x33   :  { %v128_v43 = vor.u32 %v126_v30, %v125_v37  ;;  %v130_v44 = vrot.slane %v125_v37, 4  ;;  %v139_v46 = vld [vmem:[#allocation2] sm:$0xf]  ;;  %v2992_v30 = vld [vmem:[#allocation4 + $0x8] sm:$0xff]   ;;  %p3126_p3 = scmp.lt.s32.totalorder %s2602_s28, %s2602_s28 }
  0x34   :  { %v112_v45 = vsel %vm3268_vm7, %v104_v36, %v111_v38  ;;  %v147_v47 = vld [vmem:[#allocation2 + $0xc] sm:$0xf]  ;;  %v140_v49 = vsel %vm3274_vm8, %v103_v35, %v139_v46  ;;  %v2993_v36 = vld [vmem:[#allocation4 + $0x10] sm:$0xff]  }
  0x35   :  { %2857 = vmatpush3.bf16.msra.mxu1 %v2990_v14  ;;  %v129_v48 = vsel %vm3268_vm7, %v121_v41, %v128_v43  ;;  %143 = vst.msk [vmem:[#allocation2 + $0x4] sm:$0xf] %vm137_vm6, %v112_v45  ;;  %v144_v50 = vld [vmem:[#allocation2 + $0x8] sm:$0x1]  ;;  %v148_v51 = vsel %vm3274_vm8, %v120_v40, %v147_v47  ;;  %141 = vst [vmem:[#allocation2] sm:$0xf] %v140_v49 }
  0x36   :  { %v151_v52 = vld [vmem:[#allocation2 + $0x14] sm:$0x1]  ;;  %v145_v53 = vsel %vm3235_vm2, %v113_v39, %v144_v50  ;;  %150 = vst.msk [vmem:[#allocation2 + $0x10] sm:$0xf] %vm137_vm6, %v129_v48  ;;  %149 = vst [vmem:[#allocation2 + $0xc] sm:$0xf] %v148_v51  ;;  %2862 = vmatprep.subr.bf16.mxu1 %v3264_v33 }
  0x37   :  { %v152_v54 = vsel %vm3235_vm2, %v130_v44, %v151_v52  ;;  %146 = vst [vmem:[#allocation2 + $0x8] sm:$0x1] %v145_v53  ;;  %v2994_v40 = vld [vmem:[#allocation4 + $0x18] sm:$0xff]   ;;  %v2998_v48 = vld [vmem:[#allocation4 + $0x48] sm:$0xff]   ;;  %v2999_v50 = vld [vmem:[#allocation4 + $0x50] sm:$0xff]   ;;  %vm2549_vm6 = vcmask 261120  }
  0x38   :  { %153 = vst [vmem:[#allocation2 + $0x14] sm:$0x1] %v152_v54  ;;  %vm3354_vm2 = vmand %vm541_vm0, %vm69_vm1  ;;  %vm606_vm1 = vcmask 1043456  }
  0x39   :  { %vm3413_vm5 = vmand %vm606_vm1, %vm77_vm3  ;;  %vm3158_vm3 = vmmov 0  }
  0x3c   :  { %v3293_v55 = vld [vmem:[#allocation2 + $0x4] sm:$0xf]  ;;  %v154_v56 = vld [vmem:[#allocation2] sm:$0xf] }
  0x3d   :  { %v181_v57 = vshll.u32 %v3293_v55, 16  ;;  %v185_v58 = vshrl.u32 %v3293_v55, 16  ;;  %v3297_v59 = vld [vmem:[#allocation2 + $0xc] sm:$0xf]  ;;  %v172_v61 = vshrl.u32 %v154_v56, 16  ;;  %v175_v62 = vshll.u32 %v154_v56, 16 }
  0x3e   :  { %v166_v60 = vld [vmem:[#allocation2 + $0x8] sm:$0x1]  ;;  %v3299_v63 = vld [vmem:[#allocation2 + $0x10] sm:$0xf]  ;;  %v196_v6 = vshrl.u32 %v3297_v59, 16  ;;  %v199_v7 = vshll.u32 %v3297_v59, 16  ;;  %v2623_v32 = vcombine.low %v154_v56, %v3293_v55 }
  0x3f   :  { %v183_v0 = vrot.slane %v181_v57, 5  ;;  %v187_v1 = vrot.slane %v185_v58, 4  ;;  %v191_v2 = vshll.u32 %v166_v60, 16  ;;  %v3301_v3 = vld [vmem:[#allocation2 + $0x14] sm:$0x1]  ;;  %v174_v4 = vrot.slane %v172_v61, 4 }
  0x40   :  { %v177_v5 = vrot.slane %v175_v62, 5  ;;  %v205_v11 = vshll.u32 %v3299_v63, 16  ;;  %v209_v12 = vshrl.u32 %v3299_v63, 16  ;;  %v198_v14 = vrot.slane %v196_v6, 4  ;;  %v403_v38 = vld [vmem:[#allocation2] sm:$0xe] }
  0x41   :  { %v188_v9 = vor.u32 %v187_v1, %v183_v0  ;;  %v193_v10 = vrot.slane %v191_v2, 5  ;;  %v201_v15 = vrot.slane %v199_v7, 5  ;;  %v215_v16 = vshll.u32 %v3301_v3, 16  ;;  %v404_v51 = vld [vmem:[#allocation2 + $0xc] sm:$0xe] }
  0x42   :  { %v178_v13 = vor.u32 %v177_v5, %v174_v4  ;;  %v207_v18 = vrot.slane %v205_v11, 5  ;;  %v211_v19 = vrot.slane %v209_v12, 4  ;;  %v414_v37 = vrot.slane %v3293_v55, 5  ;;  %v3000_v55 = vld [vmem:[#allocation4 + $0x58] sm:$0xff]   ;;  %v546_v62 = vld [vmem:[#allocation3 + $0xc] sm:$0x1] }
  0x43   :  { %v189_v17 = vrot.slane %v188_v9, 4  ;;  %v202_v21 = vor.u32 %v201_v15, %v198_v14  ;;  %v217_v24 = vrot.slane %v215_v16, 5  ;;  %v417_v39 = vrot.slane %v166_v60, 5  ;;  %v3001_v60 = vld [vmem:[%s3719_s3 + $0x80] ss:$8 sps:$4 sm:$0xff]  }
  0x44   :  { %v179_v20 = vrot.slane %v178_v13, 4  ;;  %v212_v23 = vor.u32 %v211_v19, %v207_v18  ;;  %v2631_v41 = vrot.slane %v403_v38, 9  ;;  %v416_v42 = vrot.slane %v414_v37, 4  ;;  %v553_v2 = vld [vmem:[#allocation3 + $0x14] sm:$0x1] }
  0x45   :  { %v194_v22 = vsel %vm3307_vm11, %v189_v17, %v193_v10  ;;  %v203_v26 = vrot.slane %v202_v21, 4  ;;  %v2624_v46 = vcombine.low %v3297_v59, %v3299_v63  ;;  %v421_v49 = vrot.slane %v3299_v63, 5  ;;  %v3003_v59 = vld [vmem:[%s3719_s3 + $0x84] ss:$8 sps:$4 sm:$0xff]   ;;  %v550_v5 = vld [vmem:[#allocation3 + $0x8] sm:$0x1] }
  0x46   :  { %v184_v25 = vsel %vm3307_vm11, %v179_v20, %v183_v0  ;;  %v213_v28 = vrot.slane %v212_v23, 4  ;;  %v415_v44 = vsel %vm3328_vm15, %v2631_v41, %v414_v37  ;;  %v418_v45 = vsel %vm3328_vm15, %v416_v42, %v417_v39  ;;  %v543_v0 = vld [vmem:[#allocation3] sm:$0x1]  ;;  %v3009_v9 = vld [vmem:[%s3719_s3 + $0xa4] ss:$8 sps:$4 sm:$0xff]  }
  0x47   :  { %v2615_v27 = vcombine.low %v184_v25, %v194_v22  ;;  %v208_v29 = vsel %vm3307_vm11, %v203_v26, %v207_v18  ;;  %v2633_v47 = vcombine.low %v415_v44, %v418_v45  ;;  %v424_v52 = vrot.slane %v3301_v3, 5  ;;  %v3006_v3 = vld [vmem:[%s3719_s3 + $0x94] ss:$8 sps:$4 sm:$0xff]   ;;  %v3004_v6 = vld [vmem:[%s3719_s3 + $0x90] ss:$8 sps:$4 sm:$0xff]  }
  0x48   :  { %v218_v31 = vsel %vm3307_vm11, %v213_v28, %v217_v24  ;;  %v2632_v53 = vrot.slane %v404_v51, 9  ;;  %v423_v54 = vrot.slane %v421_v49, 4  ;;  %v547_v63 = vsel %vm3354_vm2, 0, %v546_v62  ;;  %v3007_v10 = vld [vmem:[%s3719_s3 + $0xa0] ss:$8 sps:$4 sm:$0xff]  }
  0x49   :  { %2858 = vmatprep.mubr.msk.bf16.mxu1 %vm258_vm12, %v2615_v27  ;;  %v2616_v35 = vcombine.low %v208_v29, %v218_v31  ;;  %548 = vst [vmem:[#allocation3 + $0xc] sm:$0x1] %v547_v63  ;;  %v544_v1 = vsel %vm3354_vm2, 0, %v543_v0  ;;  %v554_v4 = vsel %vm549_vm4, 0, %v553_v2  ;;  %v551_v7 = vsel %vm549_vm4, 0, %v550_v5 }
  0x4a   :  { %v422_v56 = vsel %vm3328_vm15, %v2632_v53, %v421_v49  ;;  %v425_v57 = vsel %vm3328_vm15, %v423_v54, %v424_v52  ;;  %545 = vst [vmem:[#allocation3] sm:$0x1] %v544_v1  ;;  %555 = vst [vmem:[#allocation3 + $0x14] sm:$0x1] %v554_v4  ;;  %v3012_v11 = vld [vmem:[%s3719_s3 + $0xb4] ss:$8 sps:$4 sm:$0xff]  }
  0x4b   :  { %2859 = vmatmul.mubr.msk.bf16.vlgmr.msra.gmra.mrb[0].mxu1 %vm258_vm12, %v2616_v35  ;;  %v2634_v58 = vcombine.low %v422_v56, %v425_v57  ;;  %552 = vst [vmem:[#allocation3 + $0x8] sm:$0x1] %v551_v7  ;;  %v3010_v12 = vld [vmem:[%s3719_s3 + $0xb0] ss:$8 sps:$4 sm:$0xff]   ;;  %v3013_v13 = vld [vmem:[%s3719_s3 + $0xc0] ss:$8 sps:$4 sm:$0xff]  }
  0x4c   :  { %2863 = vmatpush3.bf16.msra.mxu1 %v3264_v33  ;;  %2870 = vmatprep.mubr.msk.bf16.mxu1 %vm258_vm12, %v2623_v32  ;;  %v2996_v33 = vld [vmem:[#allocation4 + $0x40] sm:$0xff]   ;;  %v3015_v14 = vld [vmem:[%s3719_s3 + $0xc4] ss:$8 sps:$4 sm:$0xff]   ;;  %v3155_v17 = vmov 0   ;;  %v3019_v19 = vld [vmem:[%s3719_s3 + $0xe0] ss:$8 sps:$4 sm:$0xff]  }
  0x4d   :  { %2864 = vmatprep.subr.bf16.mxu1 %v2992_v30  ;;  %v3018_v15 = vld [vmem:[%s3719_s3 + $0xd4] ss:$8 sps:$4 sm:$0xff]   ;;  %v3016_v16 = vld [vmem:[%s3719_s3 + $0xd0] ss:$8 sps:$4 sm:$0xff]   ;;  %v3021_v18 = vld [vmem:[%s3719_s3 + $0xe4] ss:$8 sps:$4 sm:$0xff]  }
  0x4e   :  { %v3024_v20 = vld [vmem:[%s3719_s3 + $0xf4] ss:$8 sps:$4 sm:$0xff]   ;;  %v3022_v21 = vld [vmem:[%s3719_s3 + $0xf0] ss:$8 sps:$4 sm:$0xff]   ;;  %v3027_v22 = vld [vmem:[%s3719_s3 + $0x4] ss:$8 sps:$4 sm:$0xff]  }
  0x4f   :  { %v2641_v23 = vld [vmem:[%s3718_s2] ss:$0 sm:$0xff] }
  0x50   :  { %2865 = vmatpush3.bf16.msra.mxu1 %v2992_v30 }
  0x51   :  { %2866 = vmatprep.subr.bf16.mxu1 %v2993_v36  ;;  %v608_v53 = vld [vmem:[#allocation3] sm:$0xf]  ;;  %v619_v57 = vld [vmem:[#allocation3 + $0x14] sm:$0x1] }
  0x52   :  { %v612_v1 = vld [vmem:[#allocation3 + $0x8] sm:$0x1] }
  0x54   :  { %2867 = vmatpush3.bf16.msra.mxu1 %v2993_v36 }
  0x55   :  { %2868 = vmatprep.subr.bf16.mxu1 %v2994_v40 }
  0x58   :  { %2869 = vmatpush3.bf16.msra.mxu1 %v2994_v40 }
  0x59   :  { %2874 = vmatprep.subr.bf16.mxu1 %v2996_v33 }
  0x5b   :  { %2871 = vmatmul.mubr.msk.bf16.vlgmr.msra.gmra.mrb[0].mxu1 %vm258_vm12, %v2624_v46 }
  0x5c   :  { %2875 = vmatpush3.bf16.msra.mxu1 %v2996_v33  ;;  %2882 = vmatprep.mubr.msk.bf16.mxu1 %vm258_vm12, %v2633_v47 }
  0x5d   :  { %2876 = vmatprep.subr.bf16.mxu1 %v2998_v48 }
  0x60   :  { %2877 = vmatpush3.bf16.msra.mxu1 %v2998_v48  ;;  %v615_v48 = vld [vmem:[#allocation3 + $0xc] sm:$0xf] }
  0x61   :  { %2878 = vmatprep.subr.bf16.mxu1 %v2999_v50 }
  0x64   :  { %2879 = vmatpush3.bf16.msra.mxu1 %v2999_v50 }
  0x65   :  { %2880 = vmatprep.subr.bf16.mxu1 %v3000_v55 }
  0x68   :  { %2881 = vmatpush3.bf16.msra.mxu1 %v3000_v55 }
  0x69   :  { %797 = vmatprep.subr.bf16.mxu1 %v3003_v59 }
  0x6b   :  { %2883 = vmatmul.mubr.msk.bf16.vlgmr.msra.gmra.mrb[0].mxu1 %vm258_vm12, %v2634_v58 }
  0x6c   :  { %798 = vmatpush1.bf16.msra.mxu1 %v3001_v60  ;;  %829 = vmatprep.mubr.bf16.mxu1 %v3155_v17 }
  0x6d   :  { %799 = vmatprep.subr.bf16.mxu1 %v3006_v3 }
  0x70   :  { %800 = vmatpush1.bf16.msra.mxu1 %v3004_v6 }
  0x71   :  { %801 = vmatprep.subr.bf16.mxu1 %v3009_v9 }
  0x74   :  { %802 = vmatpush1.bf16.msra.mxu1 %v3007_v10 }
  0x75   :  { %803 = vmatprep.subr.bf16.mxu1 %v3012_v11 }
  0x78   :  { %804 = vmatpush1.bf16.msra.mxu1 %v3010_v12 }
  0x79   :  { %805 = vmatprep.subr.bf16.mxu1 %v3015_v14 }
  0x7c   :  { %806 = vmatpush1.bf16.msra.mxu1 %v3013_v13 }
  0x7d   :  { %807 = vmatprep.subr.bf16.mxu1 %v3018_v15 }
  0x80   :  { %808 = vmatpush1.bf16.msra.mxu1 %v3016_v16 }
  0x81   :  { %809 = vmatprep.subr.bf16.mxu1 %v3021_v18 }
  0x84   :  { %810 = vmatpush1.bf16.msra.mxu1 %v3019_v19 }
  0x85   :  { %811 = vmatprep.subr.bf16.mxu1 %v3024_v20 }
  0x88   :  { %812 = vmatpush1.bf16.msra.mxu1 %v3022_v21 }
  0x89   :  { %942 = vmatprep.subr.bf16.mxu1 %v3027_v22 }
 0x13e   :  { %v2884_v24 = vpop.f32.mrb[0].mxu1 }
 0x13f   :  { %v533_v25 = vadd.f32 %v2884_v24, %v2641_v23  ;;  %v505_v26 = vpop.f32.mrb[1].mxu1 }
 0x140   :  { %v531_v27 = vadd.f32 %v2641_v23, %v505_v26  ;;  %v2885_v28 = vpop.f32.mrb[2].mxu1 }
 0x141   :  { %v537_v29 = vmax.f32 %v533_v25, 0.0  ;;  %v534_v30 = vadd.f32 %v2885_v28, %v2641_v23  ;;  %v508_v31 = vpop.f32.mrb[3].mxu1 }
 0x142   :  { %v535_v32 = vmax.f32 %v531_v27, 0.0  ;;  %v532_v35 = vadd.f32 %v2641_v23, %v508_v31 }
 0x143   :  { %v2823_v36 = vpack.c.bf16 %v537_v29, %v537_v29  ;;  %v538_v37 = vmax.f32 %v534_v30, 0.0 }
 0x144   :  { %v2821_v38 = vpack.c.bf16 %v535_v32, %v535_v32  ;;  %v536_v39 = vmax.f32 %v532_v35, 0.0 }
 0x145   :  { %v584_v40 = vshrl.u32 %v2823_v36, 16  ;;  %v2824_v41 = vpack.c.bf16 %v538_v37, %v538_v37  ;;  %v587_v45 = vshll.u32 %v2823_v36, 16 }
 0x146   :  { %v567_v42 = vshrl.u32 %v2821_v38, 16  ;;  %v2822_v33 = vpack.c.bf16 %v536_v39, %v536_v39  ;;  %v570_v50 = vshll.u32 %v2821_v38, 16 }
 0x147   :  { %v586_v44 = vrot.slane %v584_v40, 7  ;;  %v592_v46 = vshrl.u32 %v2824_v41, 16  ;;  %v595_v55 = vshll.u32 %v2824_v41, 16 }
 0x148   :  { %v569_v49 = vrot.slane %v567_v42, 7  ;;  %v575_v51 = vshrl.u32 %v2822_v33, 16  ;;  %v578_v59 = vshll.u32 %v2822_v33, 16 }
 0x149   :  { %v589_v52 = vor.u32 %v587_v45, %v586_v44  ;;  %v594_v54 = vrot.slane %v592_v46, 7  ;;  %v590_v60 = vrot.slane %v586_v44, 4 }
 0x14a   :  { %v572_v56 = vor.u32 %v570_v50, %v569_v49  ;;  %v577_v58 = vrot.slane %v575_v51, 7  ;;  %v573_v2 = vrot.slane %v569_v49, 4  ;;  %v3025_v50 = vld [vmem:[%s3719_s3] ss:$8 sps:$4 sm:$0xff]  }
 0x14b   :  { %v616_v62 = vsel %vm3413_vm5, %v589_v52, %v615_v48  ;;  %v597_v63 = vor.u32 %v595_v55, %v594_v54  ;;  %v599_v0 = vrot.slane %v594_v54, 4 }
 0x14c   :  { %617 = vst [vmem:[#allocation3 + $0xc] sm:$0xf] %v616_v62  ;;  %v609_v3 = vsel %vm3413_vm5, %v572_v56, %v608_v53  ;;  %v580_v4 = vor.u32 %v578_v59, %v577_v58  ;;  %v582_v5 = vrot.slane %v577_v58, 4  ;;  %v3030_v56 = vld [vmem:[%s3719_s3 + $0x14] ss:$8 sps:$4 sm:$0xff]  }
 0x14d   :  { %610 = vst [vmem:[#allocation3] sm:$0xf] %v609_v3  ;;  %v598_v6 = vsel %vm3268_vm7, %v590_v60, %v597_v63  ;;  %v620_v7 = vsel %vm3354_vm2, %v599_v0, %v619_v57 }
 0x14e   :  { %618 = vst [vmem:[#allocation3 + $0x10] sm:$0xf] %v598_v6  ;;  %621 = vst [vmem:[#allocation3 + $0x14] sm:$0x1] %v620_v7  ;;  %v581_v9 = vsel %vm3268_vm7, %v573_v2, %v580_v4  ;;  %v613_v10 = vsel %vm3354_vm2, %v582_v5, %v612_v1  ;;  %v3028_v1 = vld [vmem:[%s3719_s3 + $0x10] ss:$8 sps:$4 sm:$0xff]  }
 0x14f   :  { %611 = vst [vmem:[#allocation3 + $0x4] sm:$0xf] %v581_v9  ;;  %614 = vst [vmem:[#allocation3 + $0x8] sm:$0x1] %v613_v10  ;;  %v3033_v5 = vld [vmem:[%s3719_s3 + $0x24] ss:$8 sps:$4 sm:$0xff]  }
 0x150   :  { %v3031_v6 = vld [vmem:[%s3719_s3 + $0x20] ss:$8 sps:$4 sm:$0xff]   ;;  %v3036_v10 = vld [vmem:[%s3719_s3 + $0x34] ss:$8 sps:$4 sm:$0xff]   ;;  %vm2593_vm7 = vcmask 74752  }
 0x153   :  { %v3429_v11 = vld [vmem:[#allocation3 + $0xc] sm:$0xf] }
 0x154   :  { %v3431_v12 = vld [vmem:[#allocation3] sm:$0xf]  ;;  %v669_v34 = vshrl.u32 %v3429_v11, 16  ;;  %v672_v61 = vshll.u32 %v3429_v11, 16  ;;  %v996_v41 = vld [vmem:[#allocation3 + $0xc] sm:$0xe] }
 0x155   :  { %v645_v13 = vshrl.u32 %v3431_v12, 16  ;;  %v648_v14 = vshll.u32 %v3431_v12, 16  ;;  %v3435_v15 = vld [vmem:[#allocation3 + $0x10] sm:$0xf]  ;;  %v995_v32 = vld [vmem:[#allocation3] sm:$0xe] }
 0x156   :  { %v3437_v16 = vld [vmem:[#allocation3 + $0x4] sm:$0xf]  ;;  %v642_v18 = vld [vmem:[#allocation3 + $0x8] sm:$0x1]  ;;  %v678_v24 = vshll.u32 %v3435_v15, 16  ;;  %v682_v28 = vshrl.u32 %v3435_v15, 16 }
 0x157   :  { %v647_v19 = vrot.slane %v645_v13, 4  ;;  %v650_v20 = vrot.slane %v648_v14, 5  ;;  %v654_v21 = vshll.u32 %v3437_v16, 16  ;;  %v658_v22 = vshrl.u32 %v3437_v16, 16  ;;  %v643_v37 = vld [vmem:[#allocation3 + $0x14] sm:$0x1] }
 0x158   :  { %v664_v23 = vshll.u32 %v642_v18, 16  ;;  %v671_v29 = vrot.slane %v669_v34, 4  ;;  %v674_v30 = vrot.slane %v672_v61, 5  ;;  %v680_v31 = vrot.slane %v678_v24, 5  ;;  %v3034_v13 = vld [vmem:[%s3719_s3 + $0x30] ss:$8 sps:$4 sm:$0xff]  }
 0x159   :  { %v651_v25 = vor.u32 %v650_v20, %v647_v19  ;;  %v656_v26 = vrot.slane %v654_v21, 5  ;;  %v660_v27 = vrot.slane %v658_v22, 4  ;;  %v684_v38 = vrot.slane %v682_v28, 4  ;;  %v3037_v14 = vld [vmem:[%s3719_s3 + $0x40] ss:$8 sps:$4 sm:$0xff]  }
 0x15a   :  { %v1006_v39 = vrot.slane %v642_v18, 5  ;;  %v1003_v40 = vrot.slane %v3437_v16, 5  ;;  %v666_v33 = vrot.slane %v664_v23, 5  ;;  %v2698_v45 = vrot.slane %v995_v32, 9  ;;  %v3042_v18 = vld [vmem:[%s3719_s3 + $0x54] ss:$8 sps:$4 sm:$0xff]  }
 0x15b   :  { %v652_v35 = vrot.slane %v651_v25, 4  ;;  %v661_v36 = vor.u32 %v660_v27, %v656_v26  ;;  %v685_v44 = vor.u32 %v684_v38, %v680_v31  ;;  %v675_v46 = vor.u32 %v674_v30, %v671_v29  ;;  %v3040_v34 = vld [vmem:[%s3719_s3 + $0x50] ss:$8 sps:$4 sm:$0xff]   ;;  %v3045_v61 = vld [vmem:[%s3719_s3 + $0x64] ss:$8 sps:$4 sm:$0xff]  }
 0x15c   :  { %v688_v47 = vshll.u32 %v643_v37, 16  ;;  %v1005_v48 = vrot.slane %v1003_v40, 4  ;;  %v1010_v49 = vrot.slane %v3435_v15, 5  ;;  %v3456_v53 = vsel %vm3328_vm15, %v2698_v45, %v1003_v40  ;;  %v3043_v19 = vld [vmem:[%s3719_s3 + $0x60] ss:$8 sps:$4 sm:$0xff]   ;;  %v1261_v38 = vld [vmem:[#allocation7] sm:$0xff] }
 0x15d   :  { %v662_v42 = vrot.slane %v661_v36, 4  ;;  %v657_v51 = vsel %vm3307_vm11, %v652_v35, %v656_v26  ;;  %v2699_v54 = vrot.slane %v996_v41, 9  ;;  %v1013_v59 = vrot.slane %v643_v37, 5  ;;  %v3048_v20 = vld [vmem:[%s3719_s3 + $0x74] ss:$8 sps:$4 sm:$0xff]  }
 0x15e   :  { %v3463_v57 = vsel %vm3328_vm15, %v1005_v48, %v1006_v39  ;;  %v1012_v58 = vrot.slane %v1010_v49, 4  ;;  %v686_v60 = vrot.slane %v685_v44, 4  ;;  %v676_v2 = vrot.slane %v675_v46, 4  ;;  %v3046_v21 = vld [vmem:[%s3719_s3 + $0x70] ss:$8 sps:$4 sm:$0xff]   ;;  %v1296_v48 = vld [vmem:[#allocation7 + $0x118] sm:$0xff] }
 0x15f   :  { %v667_v52 = vsel %vm3307_vm11, %v662_v42, %v666_v33  ;;  %v2716_v62 = vcombine.low %v3456_v53, %v3463_v57  ;;  %v3469_v63 = vsel %vm3328_vm15, %v2699_v54, %v1010_v49  ;;  %v690_v3 = vrot.slane %v688_v47, 5  ;;  %v3052_v22 = vld [vmem:[%s3719_s3 + $0x104] ss:$8 sps:$4 sm:$0xff]   ;;  %v3050_v23 = vld [vmem:[%s3719_s3 + $0x100] ss:$8 sps:$4 sm:$0xff]   ;;  %v1277_v39 = vld [vmem:[#allocation7 + $0x80] sm:$0xff] }
 0x160   :  { %v2662_v55 = vcombine.low %v657_v51, %v667_v52  ;;  %v3473_v0 = vsel %vm3328_vm15, %v1012_v58, %v1013_v59  ;;  %v681_v7 = vsel %vm3307_vm11, %v676_v2, %v680_v31  ;;  %v2680_v24 = vcombine.low %v3431_v12, %v3437_v16  ;;  %v3055_v25 = vld [vmem:[%s3719_s3 + $0x114] ss:$8 sps:$4 sm:$0xff]   ;;  %v3053_v26 = vld [vmem:[%s3719_s3 + $0x110] ss:$8 sps:$4 sm:$0xff]   ;;  %v3059_v27 = vld [vmem:[%s3719_s3 + $0x124] ss:$8 sps:$4 sm:$0xff]  }
 0x161   :  { %v2717_v4 = vcombine.low %v3469_v63, %v3473_v0  ;;  %v691_v43 = vsel %vm3307_vm11, %v686_v60, %v690_v3  ;;  %v3057_v12 = vld [vmem:[%s3719_s3 + $0x120] ss:$8 sps:$4 sm:$0xff]   ;;  %v2681_v16 = vcombine.low %v3429_v11, %v3435_v15  ;;  %v3062_v28 = vld [vmem:[%s3719_s3 + $0x134] ss:$8 sps:$4 sm:$0xff]   ;;  %v3060_v29 = vld [vmem:[%s3719_s3 + $0x130] ss:$8 sps:$4 sm:$0xff]   ;;  %v2750_v40 = vcombine.high %v1261_v38, %v1277_v39 }
 0x162   :  { %830 = vmatmul.mubr.bf16.vlgmr.msra.gmra.mrb[4].mxu1 %v2662_v55  ;;  %v2663_v9 = vcombine.low %v681_v7, %v691_v43  ;;  %v3065_v30 = vld [vmem:[%s3719_s3 + $0x144] ss:$8 sps:$4 sm:$0xff]   ;;  %v3063_v11 = vld [vmem:[%s3719_s3 + $0x140] ss:$8 sps:$4 sm:$0xff]   ;;  %v3068_v15 = vld [vmem:[%s3719_s3 + $0x154] ss:$8 sps:$4 sm:$0xff]   ;;  %v2749_v41 = vcombine.low %v1261_v38, %v1277_v39 }
 0x163   :  { %943 = vmatpush1.bf16.msra.mxu1 %v3025_v50  ;;  %839 = vmatprep.mubr.bf16.mxu1 %v3155_v17  ;;  %v3066_v31 = vld [vmem:[%s3719_s3 + $0x150] ss:$8 sps:$4 sm:$0xff]   ;;  %v3071_v32 = vld [vmem:[%s3719_s3 + $0x164] ss:$8 sps:$4 sm:$0xff]   ;;  %v3069_v35 = vld [vmem:[%s3719_s3 + $0x160] ss:$8 sps:$4 sm:$0xff]  }
 0x164   :  { %944 = vmatprep.subr.bf16.mxu1 %v3030_v56  ;;  %v3074_v36 = vld [vmem:[%s3719_s3 + $0x174] ss:$8 sps:$4 sm:$0xff]   ;;  %v3072_v37 = vld [vmem:[%s3719_s3 + $0x170] ss:$8 sps:$4 sm:$0xff]   ;;  %v1264_v42 = vld [vmem:[#allocation7 + $0x18] sm:$0xff] }
 0x165   :  { %v1280_v33 = vld [vmem:[#allocation7 + $0x98] sm:$0xff]  ;;  %v1293_v46 = vld [vmem:[#allocation7 + $0x100] sm:$0xff]  ;;  %v3583_v52 = vld [vmem:[#allocation7 + $0x8] sm:$0xff] }
 0x166   :  { %v2756_v44 = vcombine.high %v1264_v42, %v1280_v33  ;;  %v2755_v45 = vcombine.low %v1264_v42, %v1280_v33  ;;  %v1309_v47 = vld [vmem:[#allocation7 + $0x180] sm:$0xff]  ;;  %v1312_v50 = vld [vmem:[#allocation7 + $0x198] sm:$0xff]  ;;  %v3585_v53 = vld [vmem:[#allocation7 + $0x88] sm:$0xff] }
 0x167   :  { %945 = vmatpush1.bf16.msra.mxu1 %v3028_v1  ;;  %v2782_v49 = vcombine.high %v1293_v46, %v1309_v47  ;;  %v2781_v51 = vcombine.low %v1293_v46, %v1309_v47  ;;  %v2787_v54 = vcombine.low %v1296_v48, %v1312_v50  ;;  %v2751_v55 = vcombine.low %v3583_v52, %v3585_v53  ;;  %v3591_v57 = vld [vmem:[#allocation7 + $0x20] sm:$0xff]  ;;  %v1181_v1 = vld [vmem:[%s3720_s4] sm:$0x3] }
 0x168   :  { %946 = vmatprep.subr.bf16.mxu1 %v3033_v5  ;;  %2004 = vmatprep.subr.bf16.mxu0 %v2756_v44  ;;  %v2752_v56 = vcombine.high %v3583_v52, %v3585_v53  ;;  %v3593_v58 = vld [vmem:[#allocation7 + $0xa0] sm:$0xff] }
 0x169   :  { %2005 = vmatpush1.bf16.xpose.msra.mxu0 %v2755_v45  ;;  %v2757_v59 = vcombine.low %v3591_v57, %v3593_v58  ;;  %v2758_v60 = vcombine.high %v3591_v57, %v3593_v58 }
 0x16a   :  { %840 = vmatmul.mubr.bf16.gmra.mrb[8].mxu1 %v2663_v9 }
 0x16b   :  { %947 = vmatpush1.bf16.msra.mxu1 %v3031_v6  ;;  %974 = vmatprep.mubr.bf16.mxu1 %v3155_v17 }
 0x16c   :  { %948 = vmatprep.subr.bf16.mxu1 %v3036_v10 }
 0x16f   :  { %949 = vmatpush1.bf16.msra.mxu1 %v3034_v13 }
 0x170   :  { %950 = vmatprep.subr.bf16.mxu1 %v3039_v8 }
 0x173   :  { %951 = vmatpush1.bf16.msra.mxu1 %v3037_v14 }
 0x174   :  { %952 = vmatprep.subr.bf16.mxu1 %v3042_v18 }
 0x177   :  { %953 = vmatpush1.bf16.msra.mxu1 %v3040_v34 }
 0x178   :  { %954 = vmatprep.subr.bf16.mxu1 %v3045_v61 }
 0x17b   :  { %955 = vmatpush1.bf16.msra.mxu1 %v3043_v19 }
 0x17c   :  { %956 = vmatprep.subr.bf16.mxu1 %v3048_v20 }
 0x17f   :  { %957 = vmatpush1.bf16.msra.mxu1 %v3046_v21 }
 0x180   :  { %1120 = vmatprep.subr.bf16.mxu1 %v3052_v22 }
 0x182   :  { %975 = vmatmul.mubr.bf16.vlgmr.msra.gmra.mrb[4].mxu1 %v2680_v24 }
 0x183   :  { %1121 = vmatpush1.bf16.msra.mxu1 %v3050_v23  ;;  %984 = vmatprep.mubr.bf16.mxu1 %v3155_v17 }
 0x184   :  { %1122 = vmatprep.subr.bf16.mxu1 %v3055_v25 }
 0x187   :  { %1123 = vmatpush1.bf16.msra.mxu1 %v3053_v26 }
 0x188   :  { %1124 = vmatprep.subr.bf16.mxu1 %v3059_v27 }
 0x18a   :  { %985 = vmatmul.mubr.bf16.gmra.mrb[8].mxu1 %v2681_v16 }
 0x18b   :  { %1125 = vmatpush1.bf16.msra.mxu1 %v3057_v12  ;;  %1152 = vmatprep.mubr.bf16.mxu1 %v3155_v17 }
 0x18c   :  { %1126 = vmatprep.subr.bf16.mxu1 %v3062_v28 }
 0x18f   :  { %1127 = vmatpush1.bf16.msra.mxu1 %v3060_v29 }
 0x190   :  { %1128 = vmatprep.subr.bf16.mxu1 %v3065_v30 }
 0x193   :  { %1129 = vmatpush1.bf16.msra.mxu1 %v3063_v11 }
 0x194   :  { %1130 = vmatprep.subr.bf16.mxu1 %v3068_v15 }
 0x197   :  { %1131 = vmatpush1.bf16.msra.mxu1 %v3066_v31  ;;  %v3156_v31 = vmov 1966171168  }
 0x198   :  { %1132 = vmatprep.subr.bf16.mxu1 %v3071_v32  ;;  %v1338_v32 = vunpack.c.l.s4 %v3156_v31 }
 0x19b   :  { %1133 = vmatpush1.bf16.msra.mxu1 %v3069_v35 }
 0x19c   :  { %1134 = vmatprep.subr.bf16.mxu1 %v3074_v36 }
 0x19f   :  { %1135 = vmatpush1.bf16.msra.mxu1 %v3072_v37 }
 0x1a0   :  { %1884 = vmatprep.subr.bf16.mxu1 %v2750_v40 }
 0x1a2   :  { %1153 = vmatmul.mubr.bf16.vlgmr.msra.gmra.mrb[4].mxu1 %v2716_v62  ;;  %v1183_v62 = vlaneseq }
 0x1a3   :  { %1162 = vmatprep.mubr.bf16.mxu1 %v3155_v17  ;;  %v2788_v17 = vcombine.high %v1296_v48, %v1312_v50 }
 0x1a4   :  { %v1184_v63 = vshrl.u32 %v1183_v62, 7 }
 0x1a5   :  { %2006 = vmatprep.subr.bf16.mxu0 %v2788_v17 }
 0x1a6   :  { %2007 = vmatpush1.bf16.xpose.msra.mxu0 %v2787_v54  ;;  %v1185_v0 = vsub.s32 0, %v1184_v63  ;;  %v1189_v2 = vsub.s32 1, %v1184_v63 }
 0x1a7   :  { %2044 = vmatprep.subr.bf16.mxu0 %v2758_v60 }
 0x1a8   :  { %1885 = vmatpush1.bf16.xpose.msra.mxu1 %v2749_v41  ;;  %v1186_v3 = vrot.slane %v1181_v1, %v1185_v0  ;;  %v1339_v41 = vunpack.c.0.s8 %v1338_v32 }
 0x1a9   :  { %1886 = vmatprep.subr.bf16.mxu1 %v2782_v49 }
 0x1aa   :  { %1163 = vmatmul.mubr.bf16.gmra.mrb[8].mxu1 %v2717_v4  ;;  %v1190_v4 = vrot.slane %v1181_v1, %v1189_v2  ;;  %v3602_v48 = vsub.s32 %v1339_v41, %v1184_v63 }
 0x1b0   :  { %1887 = vmatpush1.bf16.xpose.msra.mxu1 %v2781_v51 }
 0x1b1   :  { %1924 = vmatprep.subr.bf16.mxu1 %v2752_v56 }
 0x275   :  { %v1154_v5 = vpop.f32.mrb[4].mxu1 }
 0x276   :  { %v1193_v43 = vadd.f32 %v1186_v3, %v1154_v5  ;;  %v1156_v6 = vpop.f32.mrb[5].mxu1  ;;  %v1294_v5 = vld [vmem:[#allocation7 + $0x108] sm:$0xff] }
 0x277   :  { %v1194_v7 = vadd.f32 %v1190_v4, %v1156_v6  ;;  %v1158_v9 = vpop.f32.mrb[6].mxu1 }
 0x278   :  { %v1201_v10 = vmax.f32 %v1193_v43, 0.0  ;;  %v1195_v13 = vadd.f32 %v1186_v3, %v1158_v9  ;;  %v1160_v8 = vpop.f32.mrb[7].mxu1  ;;  %v1310_v43 = vld [vmem:[#allocation7 + $0x188] sm:$0xff] }
 0x279   :  { %v1202_v14 = vmax.f32 %v1194_v7, 0.0  ;;  %v1196_v18 = vadd.f32 %v1190_v4, %v1160_v8  ;;  %v2783_v31 = vcombine.low %v1294_v5, %v1310_v43 }
 0x27a   :  { %v1203_v34 = vmax.f32 %v1195_v13, 0.0 }
 0x27b   :  { %v2825_v61 = vpack.c.bf16 %v1202_v14, %v1201_v10  ;;  %v1204_v19 = vmax.f32 %v1196_v18, 0.0  ;;  %v2784_v14 = vcombine.high %v1294_v5, %v1310_v43 }
 0x27d   :  { %v2826_v20 = vpack.c.bf16 %v1204_v19, %v1203_v34  ;;  %v1164_v21 = vpop.f32.mrb[8].mxu1  ;;  %v1230_v22 = vunpack.i.h.s16 %v2825_v61 }
 0x27e   :  { %v1197_v23 = vadd.f32 %v1186_v3, %v1164_v21  ;;  %v1166_v24 = vpop.f32.mrb[9].mxu1 }
 0x27f   :  { %v1198_v25 = vadd.f32 %v1190_v4, %v1166_v24  ;;  %v1168_v26 = vpop.f32.mrb[10].mxu1  ;;  %v1238_v27 = vunpack.i.h.s16 %v2826_v20  ;;  %v2738_v11 = vpack.c.b16 %v1230_v22, %v2825_v61  ;;  %v1313_v24 = vld [vmem:[#allocation7 + $0x1a0] sm:$0xff] }
 0x280   :  { %v1205_v12 = vmax.f32 %v1197_v23, 0.0  ;;  %v1199_v16 = vadd.f32 %v1186_v3, %v1168_v26  ;;  %v1170_v28 = vpop.f32.mrb[11].mxu1  ;;  %v1297_v23 = vld [vmem:[#allocation7 + $0x120] sm:$0xff] }
 0x281   :  { %v1206_v29 = vmax.f32 %v1198_v25, 0.0  ;;  %v1200_v30 = vadd.f32 %v1190_v4, %v1170_v28  ;;  %v2740_v37 = vpack.c.b16 %v1238_v27, %v2826_v20  ;;  %v1233_v40 = vunpack.i.h.s16 %v2738_v11 }
 0x282   :  { %v1207_v15 = vmax.f32 %v1199_v16, 0.0  ;;  %v2790_v16 = vcombine.high %v1297_v23, %v1313_v24  ;;  %v2789_v57 = vcombine.low %v1297_v23, %v1313_v24  ;;  %v1269_v24 = vld [vmem:[#allocation7 + $0x40] sm:$0xff] }
 0x283   :  { %v2827_v35 = vpack.c.bf16 %v1206_v29, %v1205_v12  ;;  %v1208_v36 = vmax.f32 %v1200_v30, 0.0  ;;  %v1241_v44 = vunpack.i.h.s16 %v2740_v37  ;;  %v2739_v47 = vpack.c.b16 %v1233_v40, %v2738_v11  ;;  %v1263_v30 = vld [vmem:[#allocation7 + $0x10] sm:$0xff] }
 0x284   :  { %v1279_v11 = vld [vmem:[#allocation7 + $0x90] sm:$0xff] }
 0x285   :  { %v1246_v38 = vunpack.i.h.s16 %v2827_v35  ;;  %v2828_v39 = vpack.c.bf16 %v1208_v36, %v1207_v15  ;;  %v2741_v17 = vpack.c.b16 %v1241_v44, %v2740_v37  ;;  %v1236_v60 = vunpack.i.h.s16 %v2739_v47  ;;  %v1266_v37 = vld [vmem:[#allocation7 + $0x28] sm:$0xff]  ;;  %v1311_v44 = vld [vmem:[#allocation7 + $0x190] sm:$0xff] }
 0x287   :  { %v2742_v42 = vpack.c.b16 %v1246_v38, %v2827_v35  ;;  %v1254_v33 = vunpack.i.h.s16 %v2828_v39  ;;  %v1244_v3 = vunpack.i.h.s16 %v2741_v17  ;;  %v2754_v35 = vcombine.high %v1263_v30, %v1279_v11  ;;  %v1282_v38 = vld [vmem:[#allocation7 + $0xa8] sm:$0xff] }
 0x289   :  { %v1249_v45 = vunpack.i.h.s16 %v2742_v42  ;;  %v2744_v46 = vpack.c.b16 %v1254_v33, %v2828_v39  ;;  %v1295_v33 = vld [vmem:[#allocation7 + $0x110] sm:$0xff] }
 0x28b   :  { %v2743_v49 = vpack.c.b16 %v1249_v45, %v2742_v42  ;;  %v1257_v50 = vunpack.i.h.s16 %v2744_v46  ;;  %v2760_v42 = vcombine.high %v1266_v37, %v1282_v38 }
 0x28d   :  { %v1252_v51 = vunpack.i.h.s16 %v2743_v49  ;;  %v2747_v54 = vpack.i.b16 %v2743_v49, %v2739_v47  ;;  %v2745_v56 = vpack.c.b16 %v1257_v50, %v2744_v46  ;;  %v2753_v46 = vcombine.low %v1263_v30, %v1279_v11  ;;  %v1298_v50 = vld [vmem:[#allocation7 + $0x128] sm:$0xff] }
 0x28e   :  { %v2786_v49 = vcombine.high %v1295_v33, %v1311_v44 }
 0x28f   :  { %v1260_v62 = vunpack.i.h.s16 %v2745_v56  ;;  %v2748_v0 = vpack.i.b16 %v2745_v56, %v2741_v17  ;;  %v1343_v1 = vrot.slane %v2747_v54, %v3602_v48  ;;  %v1336_v2 = vcombine.high %v2747_v54, %v2747_v54  ;;  %v1314_v17 = vld [vmem:[#allocation7 + $0x1a8] sm:$0xff] }
 0x290   :  { %v3605_v4 = vpack.i.b16 %v1252_v51, %v1236_v60  ;;  %v2759_v51 = vcombine.low %v1266_v37, %v1282_v38  ;;  %v2792_v56 = vcombine.high %v1298_v50, %v1314_v17 }
 0x291   :  { %v1351_v6 = vcombine.high %v1343_v1, %v1343_v1  ;;  %v1350_v63 = vrot.slane %v1336_v2, %v3602_v48  ;;  %v1441_v7 = vrot.slane %v2748_v0, %v3602_v48  ;;  %v1335_v10 = vpack.i.b16 %v1260_v62, %v1244_v3 }
 0x292   :  { %v3611_v9 = vrot.slane %v3605_v4, %v3602_v48  ;;  %v1359_v18 = vrot.slane %v1343_v1, %v3602_v48  ;;  %v1434_v19 = vcombine.high %v2748_v0, %v2748_v0  ;;  %v2785_v62 = vcombine.low %v1295_v33, %v1311_v44  ;;  %v1267_v0 = vld [vmem:[#allocation7 + $0x30] sm:$0xff] }
 0x293   :  { %v1373_v13 = vrot.slane %v1351_v6, %v3602_v48  ;;  %v1352_v8 = vcombine.high %v1350_v63, %v1350_v63  ;;  %v3616_v34 = vrot.slane %v1350_v63, %v3602_v48  ;;  %v1449_v61 = vcombine.high %v1441_v7, %v1441_v7  ;;  %v1283_v1 = vld [vmem:[#allocation7 + $0xb0] sm:$0xff] }
 0x294   :  { %v1400_v22 = vcombine.high %v3611_v9, %v3611_v9  ;;  %v3622_v25 = vrot.slane %v1441_v7, %v3602_v48  ;;  %v1448_v28 = vrot.slane %v1434_v19, %v3602_v48  ;;  %v1490_v52 = vrot.slane %v1335_v10, %v3602_v48  ;;  %v1299_v63 = vld [vmem:[#allocation7 + $0x130] sm:$0xff]  ;;  %v1300_v19 = vld [vmem:[#allocation7 + $0x138] sm:$0xff] }
 0x295   :  { %1916 = vmatprep.mubr.bf16.mxu1 %v1373_v13  ;;  %v1383_v20 = vcombine.high %v1373_v13, %v1373_v13  ;;  %v1380_v21 = vrot.slane %v1352_v8, %v3602_v48  ;;  %v3628_v27 = vrot.slane %v1449_v61, %v3602_v48  ;;  %v1382_v12 = vcombine.high %v3616_v34, %v3616_v34  ;;  %v1315_v7 = vld [vmem:[#allocation7 + $0x1b0] sm:$0xff] }
 0x296   :  { %1917 = vmatmul.mubr.bf16.vlgmr.msra.gmra.mrb[12].mxu1 %v1359_v18  ;;  %v1422_v29 = vrot.slane %v1400_v22, %v3602_v48  ;;  %v1483_v53 = vcombine.high %v1335_v10, %v1335_v10  ;;  %v3636_v15 = vrot.slane %v1448_v28, %v3602_v48  ;;  %v1498_v32 = vcombine.high %v1490_v52, %v1490_v52  ;;  %v1303_v44 = vld [vmem:[#allocation7 + $0x150] sm:$0xff] }
 0x297   :  { %1925 = vmatpush1.bf16.xpose.msra.mxu1 %v2751_v55  ;;  %1956 = vmatprep.mubr.bf16.mxu1 %v1383_v20  ;;  %v1384_v26 = vcombine.high %v1380_v21, %v1380_v21  ;;  %v1450_v55 = vcombine.high %v1448_v28, %v1448_v28  ;;  %v3648_v40 = vrot.slane %v1490_v52, %v3602_v48  ;;  %v1316_v20 = vld [vmem:[#allocation7 + $0x1b8] sm:$0xff]  ;;  %v1301_v28 = vld [vmem:[#allocation7 + $0x140] sm:$0xff] }
 0x298   :  { %1926 = vmatprep.subr.bf16.mxu1 %v2784_v14  ;;  %v3645_v39 = vrot.slane %v1498_v32, %v3602_v48  ;;  %v1497_v41 = vrot.slane %v1483_v53, %v3602_v48  ;;  %v1381_v47 = vcombine.high %v1359_v18, %v1359_v18  ;;  %v1408_v54 = vrot.slane %v3611_v9, %v3602_v48  ;;  %v1284_v14 = vld [vmem:[#allocation7 + $0xb8] sm:$0xff]  ;;  %v1286_v53 = vld [vmem:[#allocation7 + $0xc8] sm:$0xff] }
 0x299   :  { %2036 = vmatprep.mubr.bf16.mxu0 %v1384_v26  ;;  %v3642_v36 = vrot.slane %v1450_v55, %v3602_v48  ;;  %v1432_v60 = vcombine.high %v1422_v29, %v1422_v29  ;;  %v1385_v2 = vcombine.high %v3605_v4, %v3605_v4  ;;  %v2791_v3 = vcombine.low %v1298_v50, %v1314_v17  ;;  %v1268_v4 = vld [vmem:[#allocation7 + $0x38] sm:$0xff]  ;;  %v1285_v26 = vld [vmem:[#allocation7 + $0xc0] sm:$0xff]  ;;  %v1302_v32 = vld [vmem:[#allocation7 + $0x148] sm:$0xff] }
 0x29a   :  { %2037 = vmatmul.mubr.bf16.vlgmr.msra.gmra.mrb[0].mxu0 %v1382_v12  ;;  %v1499_v58 = vcombine.high %v1497_v41, %v1497_v41  ;;  %v2762_v5 = vcombine.high %v1267_v0, %v1283_v1  ;;  %v2761_v9 = vcombine.low %v1267_v0, %v1283_v1  ;;  %v1430_v10 = vcombine.high %v1408_v54, %v1408_v54  ;;  %v1288_v17 = vld [vmem:[#allocation7 + $0xd8] sm:$0xff] }
 0x29b   :  { %2045 = vmatpush1.bf16.xpose.msra.mxu0 %v2757_v59  ;;  %2076 = vmatprep.mubr.bf16.mxu0 %v1422_v29  ;;  %v3652_v59 = vrot.slane %v1497_v41, %v3602_v48  ;;  %v1399_v43 = vrot.slane %v1385_v2, %v3602_v48  ;;  %v2794_v13 = vcombine.high %v1299_v63, %v1315_v7  ;;  %v1317_v29 = vld [vmem:[#allocation7 + $0x1c0] sm:$0xff] }
 0x29c   :  { %2046 = vmatprep.subr.bf16.mxu0 %v2790_v16  ;;  %v3655_v45 = vrot.slane %v1499_v58, %v3602_v48  ;;  %v2793_v18 = vcombine.low %v1299_v63, %v1315_v7  ;;  %v2764_v61 = vcombine.high %v1268_v4, %v1284_v14  ;;  %v2796_v22 = vcombine.high %v1300_v19, %v1316_v20  ;;  %v1287_v58 = vld [vmem:[#allocation7 + $0xd0] sm:$0xff]  ;;  %v1273_v2 = vld [vmem:[#allocation7 + $0x60] sm:$0xff] }
 0x29d   :  { %v1401_v6 = vcombine.high %v1399_v43, %v1399_v43  ;;  %v2795_v12 = vcombine.low %v1300_v19, %v1316_v20  ;;  %v2766_v16 = vcombine.high %v1269_v24, %v1285_v26  ;;  %v2765_v30 = vcombine.low %v1269_v24, %v1285_v26  ;;  %v1321_v63 = vld [vmem:[#allocation7 + $0x1e0] sm:$0xff]  ;;  %v1307_v24 = vld [vmem:[#allocation7 + $0x170] sm:$0xff] }
 0x29e   :  { %v2798_v52 = vcombine.high %v1301_v28, %v1317_v29  ;;  %v2797_v55 = vcombine.low %v1301_v28, %v1317_v29  ;;  %v1481_v41 = vcombine.high %v3628_v27, %v3628_v27  ;;  %v1482_v1 = vcombine.high %v3642_v36, %v3642_v36  ;;  %v1323_v26 = vld [vmem:[#allocation7 + $0x1f0] sm:$0xff]  ;;  %v1292_v29 = vld [vmem:[#allocation7 + $0xf8] sm:$0xff] }
 0x29f   :  { %1927 = vmatpush1.bf16.xpose.msra.mxu1 %v2783_v31  ;;  %v1429_v8 = vrot.slane %v1401_v6, %v3602_v48  ;;  %v2810_v28 = vcombine.high %v1307_v24, %v1323_v26 }
 0x2a0   :  { %1964 = vmatprep.subr.bf16.mxu1 %v2754_v35  ;;  %v1318_v35 = vld [vmem:[#allocation7 + $0x1c8] sm:$0xff] }
 0x2a1   :  { %v1433_v23 = vcombine.high %v1429_v8, %v1429_v8  ;;  %v2800_v38 = vcombine.high %v1302_v32, %v1318_v35 }
 0x2a3   :  { %2047 = vmatpush1.bf16.xpose.msra.mxu0 %v2789_v57  ;;  %v1271_v57 = vld [vmem:[#allocation7 + $0x50] sm:$0xff] }
 0x2a4   :  { %2084 = vmatprep.subr.bf16.mxu0 %v2760_v42  ;;  %v2799_v42 = vcombine.low %v1302_v32, %v1318_v35  ;;  %v2770_v33 = vcombine.high %v1271_v57, %v1287_v58  ;;  %v1529_v32 = vcombine.high %v3652_v59, %v3652_v59 }
 0x2a6   :  { %1957 = vmatmul.mubr.bf16.vlgmr.msra.gmra.mrb[12].mxu1 %v1381_v47  ;;  %v2769_v47 = vcombine.low %v1271_v57, %v1287_v58  ;;  %v3076_v57 = vld [vmem:[%s3723_s7 + $0x8] sm:$0xff]  }
 0x2a7   :  { %1965 = vmatpush1.bf16.xpose.msra.mxu1 %v2753_v46  ;;  %1996 = vmatprep.mubr.bf16.mxu1 %v1380_v21  ;;  %v2763_v21 = vcombine.low %v1268_v4, %v1284_v14  ;;  %v1319_v46 = vld [vmem:[#allocation7 + $0x1d0] sm:$0xff] }
 0x2a8   :  { %1966 = vmatprep.subr.bf16.mxu1 %v2786_v49  ;;  %v1479_v49 = vcombine.high %v3622_v25, %v3622_v25  ;;  %v2802_v50 = vcombine.high %v1303_v44, %v1319_v46 }
 0x2aa   :  { %2077 = vmatmul.mubr.bf16.vlgmr.msra.gmra.mrb[0].mxu0 %v1408_v54 }
 0x2ab   :  { %2085 = vmatpush1.bf16.xpose.msra.mxu0 %v2759_v51  ;;  %2116 = vmatprep.mubr.bf16.mxu0 %v1432_v60  ;;  %v2801_v51 = vcombine.low %v1303_v44, %v1319_v46  ;;  %v1320_v60 = vld [vmem:[#allocation7 + $0x1d8] sm:$0xff] }
 0x2ac   :  { %2086 = vmatprep.subr.bf16.mxu0 %v2792_v56  ;;  %v1304_v56 = vld [vmem:[#allocation7 + $0x158] sm:$0xff] }
 0x2ad   :  { %v2804_v0 = vcombine.high %v1304_v56, %v1320_v60 }
 0x2af   :  { %1967 = vmatpush1.bf16.xpose.msra.mxu1 %v2785_v62 }
 0x2b3   :  { %2087 = vmatpush1.bf16.xpose.msra.mxu0 %v2791_v3  ;;  %v1289_v3 = vld [vmem:[#allocation7 + $0xe0] sm:$0xff] }
 0x2b4   :  { %2124 = vmatprep.subr.bf16.mxu0 %v2762_v5  ;;  %v3157_v5 = vmov 0.0   ;;  %v2774_v6 = vcombine.high %v1273_v2, %v1289_v3  ;;  %v2773_v7 = vcombine.low %v1273_v2, %v1289_v3 }
 0x2b5   :  { %2886 = vmatprep.subr.bf16.mxu1 %v3157_v5 }
 0x2b6   :  { %1997 = vmatmul.mubr.bf16.vlgmr.msra.gmra.mrb[12].mxu1 %v3616_v34  ;;  %v1415_v34 = vrot.slane %v1399_v43, %v3602_v48  ;;  %v1270_v48 = vld [vmem:[#allocation7 + $0x48] sm:$0xff]  ;;  %v2803_v43 = vcombine.low %v1304_v56, %v1320_v60 }
 0x2b7   :  { %v2768_v31 = vcombine.high %v1270_v48, %v1286_v53  ;;  %v2767_v37 = vcombine.low %v1270_v48, %v1286_v53  ;;  %v1324_v48 = vld [vmem:[#allocation7 + $0x1f8] sm:$0xff]  ;;  %2890 = vmatprep.mubr.msk.bf16.mxu1 %vm3158_vm3, %v3157_v5 }
 0x2b8   :  { %v1431_v11 = vcombine.high %v1415_v34, %v1415_v34 }
 0x2ba   :  { %2117 = vmatmul.mubr.bf16.vlgmr.msra.gmra.mrb[0].mxu0 %v1430_v10 }
 0x2bb   :  { %2125 = vmatpush1.bf16.xpose.msra.mxu0 %v2761_v9  ;;  %2156 = vmatprep.mubr.bf16.mxu0 %v1429_v8  ;;  %v1480_v9 = vcombine.high %v3636_v15, %v3636_v15  ;;  %v1290_v8 = vld [vmem:[#allocation7 + $0xe8] sm:$0xff] }
 0x2bc   :  { %2126 = vmatprep.subr.bf16.mxu0 %v2794_v13  ;;  %v1274_v13 = vld [vmem:[#allocation7 + $0x68] sm:$0xff] }
 0x2bd   :  { %v2776_v14 = vcombine.high %v1274_v13, %v1290_v8  ;;  %v2775_v19 = vcombine.low %v1274_v13, %v1290_v8 }
 0x2c3   :  { %2127 = vmatpush1.bf16.xpose.msra.mxu0 %v2793_v18  ;;  %v1306_v18 = vld [vmem:[#allocation7 + $0x168] sm:$0xff] }
 0x2c4   :  { %2164 = vmatprep.subr.bf16.mxu0 %v2764_v61  ;;  %v1322_v61 = vld [vmem:[#allocation7 + $0x1e8] sm:$0xff] }
 0x2c5   :  { %v2808_v20 = vcombine.high %v1306_v18, %v1322_v61 }
 0x2ca   :  { %2157 = vmatmul.mubr.bf16.vlgmr.msra.gmra.mrb[0].mxu0 %v1415_v34  ;;  %v1291_v34 = vld [vmem:[#allocation7 + $0xf0] sm:$0xff] }
 0x2cb   :  { %2165 = vmatpush1.bf16.xpose.msra.mxu0 %v2763_v21  ;;  %2196 = vmatprep.mubr.bf16.mxu0 %v1433_v23  ;;  %v1530_v21 = vcombine.high %v3645_v39, %v3645_v39 }
 0x2cc   :  { %2166 = vmatprep.subr.bf16.mxu0 %v2796_v22  ;;  %v2807_v22 = vcombine.low %v1306_v18, %v1322_v61 }
 0x2d3   :  { %2167 = vmatpush1.bf16.xpose.msra.mxu0 %v2795_v12 }
 0x2d4   :  { %2204 = vmatprep.subr.bf16.mxu0 %v2766_v16  ;;  %v1528_v16 = vcombine.high %v3648_v40, %v3648_v40 }
 0x2da   :  { %2197 = vmatmul.mubr.bf16.vlgmr.msra.gmra.mrb[0].mxu0 %v1431_v11 }
 0x2db   :  { %2205 = vmatpush1.bf16.xpose.msra.mxu0 %v2765_v30  ;;  %2236 = vmatprep.mubr.bf16.mxu0 %v3628_v27  ;;  %v1272_v27 = vld [vmem:[#allocation7 + $0x58] sm:$0xff]  ;;  %v2809_v30 = vcombine.low %v1307_v24, %v1323_v26 }
 0x2dc   :  { %2206 = vmatprep.subr.bf16.mxu0 %v2798_v52  ;;  %v2772_v54 = vcombine.high %v1272_v27, %v1288_v17  ;;  %v2771_v62 = vcombine.low %v1272_v27, %v1288_v17  ;;  %v1308_v52 = vld [vmem:[#allocation7 + $0x178] sm:$0xff] }
 0x2e3   :  { %2207 = vmatpush1.bf16.xpose.msra.mxu0 %v2797_v55  ;;  %v2812_v55 = vcombine.high %v1308_v52, %v1324_v48 }
 0x2e4   :  { %2244 = vmatprep.subr.bf16.mxu0 %v2768_v31  ;;  %v1531_v31 = vcombine.high %v3655_v45, %v3655_v45 }
 0x2ea   :  { %2237 = vmatmul.mubr.bf16.vlgmr.msra.gmra.mrb[0].mxu0 %v3622_v25  ;;  %v3075_v25 = vld [vmem:[%s3723_s7] sm:$0xff]  }
 0x2eb   :  { %2245 = vmatpush1.bf16.xpose.msra.mxu0 %v2767_v37  ;;  %2276 = vmatprep.mubr.bf16.mxu0 %v1481_v41 }
 0x2ec   :  { %2246 = vmatprep.subr.bf16.mxu0 %v2800_v38  ;;  %2887 = vmatpush3.bf16.msra.mxu1 %v3075_v25 }
 0x2ed   :  { %2888 = vmatprep.subr.bf16.mxu1 %v3157_v5 }
 0x2f0   :  { %2889 = vmatpush3.bf16.msra.mxu1 %v3076_v57 }
 0x2f3   :  { %2247 = vmatpush1.bf16.xpose.msra.mxu0 %v2799_v42 }
 0x2f4   :  { %2284 = vmatprep.subr.bf16.mxu0 %v2770_v33 }
 0x2fa   :  { %2277 = vmatmul.mubr.bf16.vlgmr.msra.gmra.mrb[0].mxu0 %v1479_v49 }
 0x2fb   :  { %2285 = vmatpush1.bf16.xpose.msra.mxu0 %v2769_v47  ;;  %2316 = vmatprep.mubr.bf16.mxu0 %v3642_v36  ;;  %v1305_v36 = vld [vmem:[#allocation7 + $0x160] sm:$0xff] }
 0x2fc   :  { %2286 = vmatprep.subr.bf16.mxu0 %v2802_v50  ;;  %v2806_v10 = vcombine.high %v1305_v36, %v1321_v63  ;;  %v2805_v4 = vcombine.low %v1305_v36, %v1321_v63  ;;  %v2813_v50 = vld [vmem:[%s3724_s8] ss:$0 sm:$0xff] }
 0x303   :  { %2287 = vmatpush1.bf16.xpose.msra.mxu0 %v2801_v51 }
 0x304   :  { %2324 = vmatprep.subr.bf16.mxu0 %v2772_v54 }
 0x30a   :  { %2317 = vmatmul.mubr.bf16.vlgmr.msra.gmra.mrb[0].mxu0 %v3636_v15  ;;  %v1275_v15 = vld [vmem:[#allocation7 + $0x70] sm:$0xff] }
 0x30b   :  { %2325 = vmatpush1.bf16.xpose.msra.mxu0 %v2771_v62  ;;  %2356 = vmatprep.mubr.bf16.mxu0 %v1482_v1  ;;  %v2778_v23 = vcombine.high %v1275_v15, %v1291_v34  ;;  %v2777_v12 = vcombine.low %v1275_v15, %v1291_v34 }
 0x30c   :  { %2326 = vmatprep.subr.bf16.mxu0 %v2804_v0 }
 0x313   :  { %2327 = vmatpush1.bf16.xpose.msra.mxu0 %v2803_v43 }
 0x314   :  { %2364 = vmatprep.subr.bf16.mxu0 %v2774_v6 }
 0x31a   :  { %2357 = vmatmul.mubr.bf16.vlgmr.msra.gmra.mrb[0].mxu0 %v1480_v9 }
 0x31b   :  { %2365 = vmatpush1.bf16.xpose.msra.mxu0 %v2773_v7  ;;  %2396 = vmatprep.mubr.bf16.mxu0 %v3645_v39  ;;  %v1276_v39 = vld [vmem:[#allocation7 + $0x78] sm:$0xff] }
 0x31c   :  { %2366 = vmatprep.subr.bf16.mxu0 %v2806_v10  ;;  %v2780_v11 = vcombine.high %v1276_v39, %v1292_v29  ;;  %v2779_v53 = vcombine.low %v1276_v39, %v1292_v29 }
 0x323   :  { %2367 = vmatpush1.bf16.xpose.msra.mxu0 %v2805_v4 }
 0x324   :  { %2404 = vmatprep.subr.bf16.mxu0 %v2776_v14 }
 0x32a   :  { %2397 = vmatmul.mubr.bf16.vlgmr.msra.gmra.mrb[0].mxu0 %v3648_v40  ;;  %v2811_v40 = vcombine.low %v1308_v52, %v1324_v48 }
 0x32b   :  { %2405 = vmatpush1.bf16.xpose.msra.mxu0 %v2775_v19  ;;  %2436 = vmatprep.mubr.bf16.mxu0 %v1530_v21 }
 0x32c   :  { %2406 = vmatprep.subr.bf16.mxu0 %v2808_v20 }
 0x333   :  { %2407 = vmatpush1.bf16.xpose.msra.mxu0 %v2807_v22 }
 0x334   :  { %2444 = vmatprep.subr.bf16.mxu0 %v2778_v23 }
 0x33a   :  { %2437 = vmatmul.mubr.bf16.vlgmr.msra.gmra.mrb[0].mxu0 %v1528_v16 }
 0x33b   :  { %2445 = vmatpush1.bf16.xpose.msra.mxu0 %v2777_v12  ;;  %2476 = vmatprep.mubr.bf16.mxu0 %v3655_v45  ;;  %v2746_v45 = vld [vmem:[%s3722_s6] ss:$0 sm:$0xff]  ;;  %s3121_s6 = scalar_lea.vmem %s2602_s28, 32 }
 0x33c   :  { %2446 = vmatprep.subr.bf16.mxu0 %v2810_v28  ;;  %p3122_p2 = scmp.ne.s32.totalorder %s2602_s28, %s3121_s6  ;;  %p3127_p4 = scmp.lt.s32.totalorder %s3121_s6, %s3121_s6 }
 0x33e   :  { %p3128_p5 = por %p3127_p4, %p3126_p3 }
 0x340   :  { %p3129_p6 = pnand %p3128_p5, %p3122_p2 }
 0x343   :  { %2447 = vmatpush1.bf16.xpose.msra.mxu0 %v2809_v30 }
 0x344   :  { %2484 = vmatprep.subr.bf16.mxu0 %v2780_v11 }
 0x34a   :  { %2477 = vmatmul.mubr.bf16.vlgmr.msra.gmra.mrb[0].mxu0 %v3652_v59 }
 0x34b   :  { %2485 = vmatpush1.bf16.xpose.msra.mxu0 %v2779_v53  ;;  %2516 = vmatprep.mubr.bf16.mxu0 %v1531_v31 }
 0x34c   :  { %2486 = vmatprep.subr.bf16.mxu0 %v2812_v55 }
 0x353   :  { %2487 = vmatpush1.bf16.xpose.msra.mxu0 %v2811_v40 }
 0x35a   :  { %2517 = vmatmul.mubr.bf16.vlgmr.msra.gmra.mrb[0].mxu0 %v1529_v32 }
 0x389   :  { %v1998_v35 = vpop.f32.mrb[12].mxu1 }
 0x38a   :  { %v2000_v37 = vpop.f32.mrb[13].mxu1  ;;  %v2894_v58 = vadd.f32 %v2746_v45, %v1998_v35 }
 0x38b   :  { %v2001_v38 = vpop.f32.mrb[14].mxu1 }
 0x38c   :  { %v2002_v41 = vpop.f32.mrb[15].mxu1 }
 0x42d   :  { %v2518_v42 = vpop.f32.mrb[0].mxu0 }
 0x42e   :  { %v2895_v59 = vadd.f32 %v2894_v58, %v2518_v42  ;;  %v2520_v33 = vpop.f32.mrb[1].mxu0 }
 0x42f   :  { %v2521_v44 = vpop.f32.mrb[2].mxu0 }
 0x430   :  { %v2524_v46 = vmax.f32 %v2895_v59, 0.0  ;;  %v2522_v47 = vpop.f32.mrb[3].mxu0 }
 0x432   :  { %v2525_v49 = vpack.c.bf16 %v2524_v46, %v2524_v46 }
 0x434   :  { %2891 = vmatmul.mubr.msk.bf16.vlgmr.msra.gmra.mrb[16].mxu1 %vm2549_vm6, %v2525_v49 }
 0x507   :  { %v2587_v27 = vpop.f32.mrb[16].mxu1 }
 0x508   :  { %v2588_v17 = vadd.f32 %v2813_v50, %v2587_v27  ;;  %v2892_v51 = vpop.f32.mrb[17].mxu1 }
 0x509   :  { %v2590_v54 = vpop.f32.mrb[18].mxu1 }
 0x50a   :  { %v2893_v56 = vpop.f32.mrb[19].mxu1  ;;  %2594 = vst.msk [vmem:[#allocation9] sm:$0x3] %vm2593_vm7, %v2588_v17 }
 0x50b   :  { %3132 = shalt.err (!%p3129_p6)
}
 0x50c   :  { %s3133_s8 = scalar_lea.hbm %s3725_s9, 32 }
 0x50d   :  { %p3134_p7 = scmp.ne.s32.totalorder %s3725_s9, %s3133_s8  ;;  %p3137_p8 = scmp.lt.u32.totalorder %s3133_s8, %s3725_s9 }
 0x50f   :  { %p3139_p9 = pnand %p3137_p8, %p3134_p7 }
 0x511   :  { %3142 = shalt.err (!%p3139_p9)
}
 0x512   :  { %2604 = dma.vmem_to_hbm [thread:$0]  %s2602_s28, 32, %s3725_s9, [#allocation6]  }
 0x513   :  { %3147 = dma.done.wait [#allocation6], 32  }
 0x514   :  { %3148 = vsyncadd [#allocation6], 4294967264 }
 0x515   :  { %2608 = vsyncpa [#allocation5], 1 }
 0x516   :  { %2609 = vsyncpa [#allocation8], 1 }
 0x517   :  { %2610 = vsyncpa [#allocation6], 1 }

</bundles_post_ra>
